<compile_context>
chip_gen: v6e
topology: v6e:2x2x1
jax: 0.10.0
libtpu: 0.0.40
codegen_flags: <defaults>
</compile_context>

<pallas_src>
import jax
import jax.numpy as jnp
from jax.experimental import pallas as pl
from jax.experimental.pallas import tpu as pltpu

N_IN = 2          # (t, x)
HIDDEN = [32, 32]
N_OUT = 1
POLY_ORDER = 2
DIFF_ORDER = 1
N_TERMS = (POLY_ORDER + 1) * (DIFF_ORDER + 1)   # 6
PACK_ROWS = 2 + N_TERMS                          # [pred, u_t, theta_0..theta_5] = 8
H = HIDDEN[0]                                    # 32 (both hidden layers)

# Packed parameter block layout (single VMEM-resident argument):
#   rows 0:32  : [ w2 (cols 0:32) | w1_t (32) | w1_x (33) | b1 (34) | b2 (35) ]
#   rows 32:40 : row 32 = [ w3^T (cols 0:32) | b3 (col 32) | 0 ... ], rows 33..39 = 0
PP_ROWS = H + 8     # 40
PP_COLS = H + 4     # 36


def _deepmod_kernel(xt_ref, pp_ref, out_ref):
    xt = xt_ref[...]                        # (2, TN)  row 0 = t, row 1 = x (lane-dense)

    # --- unpack parameters (static slices of the single packed block) ---
    w2 = pp_ref[0:H, 0:H]                   # (32, 32)
    w1t = pp_ref[0:H, H:H + 1]              # (32, 1)  d/dt input weights (column)
    w1x = pp_ref[0:H, H + 1:H + 2]          # (32, 1)  d/dx input weights (column)
    b1 = pp_ref[0:H, H + 2:H + 3]           # (32, 1)
    b2 = pp_ref[0:H, H + 3:H + 4]           # (32, 1)
    w3m = pp_ref[H:H + 8, 0:H]              # (8, 32)  row 0 = w3^T, rows 1..7 = 0
    b3 = pp_ref[H:H + 1, H:H + 1]           # (1, 1)

    t_row = xt[0:1, :]                      # (1, TN)
    x_row = xt[1:2, :]                      # (1, TN)

    # ---- layer 1 (K=2): VPU broadcast mul-add, no MXU ----
    z1 = w1t * t_row + w1x * x_row + b1     # (32, TN)
    a1 = jnp.tanh(z1)
    g1 = 1.0 - a1 * a1                      # tanh'
    da1_t = g1 * w1t                        # d a1 / d t
    da1_x = g1 * w1x                        # d a1 / d x

    # ---- layer 2: three separate MXU matmuls (no lane-axis concat copies) ----
    h2a = jnp.dot(w2, a1, preferred_element_type=jnp.float32)      # (32, TN)
    h2t = jnp.dot(w2, da1_t, preferred_element_type=jnp.float32)
    h2x = jnp.dot(w2, da1_x, preferred_element_type=jnp.float32)
    a2 = jnp.tanh(h2a + b2)
    g2 = 1.0 - a2 * a2
    da2_t = g2 * h2t
    da2_x = g2 * h2x

    # ---- layer 3 (32 -> 1): MXU projection via zero-padded (8,32) weight ----
    pa = jnp.dot(w3m, a2, preferred_element_type=jnp.float32)      # (8, TN), rows 1..7 = 0
    pt = jnp.dot(w3m, da2_t, preferred_element_type=jnp.float32)
    px = jnp.dot(w3m, da2_x, preferred_element_type=jnp.float32)
    pred = pa[0:1, :] + b3                  # (1, TN)
    u_t = pt[0:1, :]
    u_x = px[0:1, :]

    # ---- library: theta = kron([1, u, u^2], [1, u_x]) per sample ----
    # Direct sub-row stores into the lane-dense (8, TN) output block (no temp slab).
    u2 = pred * pred
    out_ref[0:1, :] = pred                  # row 0: prediction
    out_ref[1:2, :] = u_t                   # row 1: time derivative
    out_ref[2:3, :] = jnp.ones_like(pred)   # row 2: theta_0 = 1
    out_ref[3:4, :] = u_x                   # row 3: theta_1 = u_x
    out_ref[4:5, :] = pred                  # row 4: theta_2 = u
    out_ref[5:6, :] = pred * u_x            # row 5: theta_3 = u * u_x
    out_ref[6:7, :] = u2                    # row 6: theta_4 = u^2
    out_ref[7:8, :] = u2 * u_x              # row 7: theta_5 = u^2 * u_x


def _pack_params(params):
    """Pack the six small weight/bias arrays into one (40, 36) VMEM block."""
    w1t_, b1, w2t_, b2, w3t_, b3 = params
    w1 = jnp.transpose(w1t_).astype(jnp.float32)       # (32, 2)
    w2 = jnp.transpose(w2t_).astype(jnp.float32)       # (32, 32)
    b1c = jnp.transpose(b1).astype(jnp.float32)        # (32, 1)
    b2c = jnp.transpose(b2).astype(jnp.float32)        # (32, 1)
    w3row = jnp.transpose(w3t_).astype(jnp.float32)    # (1, 32)
    top = jnp.concatenate([w2, w1, b1c, b2c], axis=1)  # (32, 36)
    bot = jnp.zeros((8, PP_COLS), jnp.float32)
    bot = bot.at[0:1, 0:H].set(w3row)
    bot = bot.at[0:1, H:H + 1].set(b3.astype(jnp.float32))
    return jnp.concatenate([top, bot], axis=0)          # (40, 36)


def _pick_tile(n, tile_n):
    """Tile a multiple of 128, large enough to amortize grid-step overhead,
    but keeping >= 2 grid steps (both v7x TensorCores) when possible."""
    tn = max(128, (int(tile_n) // 128) * 128)
    if n > 128:
        half = (((n + 1) // 2) + 127) // 128 * 128
        tn = min(tn, half)
    return tn


def deepmod_forward(x, params, coeff_vector, *, tile_n=4096):
    """Returns (prediction, [time_deriv], [sparse_theta], [coeff_vector])."""
    n = x.shape[0]
    tn = _pick_tile(n, tile_n)
    grid_n = (n + tn - 1) // tn
    n_pad = grid_n * tn

    # Lane-dense input layout: (2, N), samples on the lane axis.
    xt = jnp.transpose(x).astype(jnp.float32)           # (2, n)
    if n_pad != n:
        xt = jnp.pad(xt, ((0, 0), (0, n_pad - n)))      # cheap wrapper padding

    pp = _pack_params(params)                            # single (40, 36) param block

    grid_spec = pltpu.PrefetchScalarGridSpec(
        num_scalar_prefetch=0,
        grid=(grid_n,),
        in_specs=[
            pl.BlockSpec((N_IN, tn), lambda i: (0, i)),
            pl.BlockSpec((PP_ROWS, PP_COLS), lambda i: (0, 0)),
        ],
        out_specs=pl.BlockSpec((PACK_ROWS, tn), lambda i: (0, i)),
    )

    packed = pl.pallas_call(
        _deepmod_kernel,
        grid_spec=grid_spec,
        out_shape=jax.ShapeDtypeStruct((PACK_ROWS, n_pad), jnp.float32),
        compiler_params=pltpu.CompilerParams(
            dimension_semantics=("parallel",)),
    )(xt, pp)

    # Single wrapper-side transpose of the packed lane-dense slab.
    unpacked = jnp.transpose(packed[:, :n])              # (n, 8)
    pred = unpacked[:, 0:1]                              # (n, 1)
    time_deriv = unpacked[:, 1:2]                        # (n, 1)
    theta = unpacked[:, 2:PACK_ROWS]                     # (n, 6)

    # Fitting layer: sparsity_mask = arange(n_terms) -> identity selection.
    return pred, [time_deriv], [theta], [coeff_vector]


def init_params(key):
    """Deterministic init mimicking nn.Linear defaults (uniform +-1/sqrt(fan_in))."""
    sizes = [N_IN] + HIDDEN + [N_OUT]
    keys = jax.random.split(key, 2 * len(sizes))
    params = []
    for li, (h0, h1) in enumerate(zip(sizes, sizes[1:])):
        bound = 1.0 / jnp.sqrt(h0)
        w = jax.random.uniform(keys[2 * li], (h1, h0), jnp.float32, -bound, bound)
        b = jax.random.uniform(keys[2 * li + 1], (1, h1), jnp.float32, -bound, bound)
        params += [w.T, b]          # stored as W^T, matching the original wrapper API
    return tuple(params)


def reference_forward(x, params):
    w1t, b1, w2t, b2, w3t, b3 = params

    def net(xi):
        a1 = jnp.tanh(xi @ w1t + b1[0])
        a2 = jnp.tanh(a1 @ w2t + b2[0])
        return a2 @ w3t + b3[0]

    pred = net(x)
    jac = jax.vmap(jax.jacfwd(net))(x)          # (N, 1, 2)
    u_t = jac[:, :, 0]
    u_x = jac[:, :, 1]
    ones = jnp.ones_like(pred)
    poly = jnp.concatenate([ones, pred, pred * pred], axis=1)
    deriv = jnp.concatenate([ones, u_x], axis=1)
    theta = (poly[:, :, None] * deriv[:, None, :]).reshape(x.shape[0], N_TERMS)
    return pred, u_t, theta


if __name__ == "__main__":
    key = jax.random.PRNGKey(0)
    k_data, k_net, k_coef = jax.random.split(key, 3)

    # Non-multiple-of-tile N exercises the padding path; the adaptive tile picker
    # yields tn=1024 here -> grid of 2 even steps (both v7x TensorCores busy).
    N = 2000
    x = jax.random.uniform(k_data, (N, N_IN), jnp.float32, -1.0, 1.0)  # cols (t, x)
    params = init_params(k_net)
    coeff_vector = jax.random.uniform(k_coef, (N_TERMS, N_OUT), jnp.float32)

    pred, time_deriv, sparse_theta, coeffs = deepmod_forward(
        x, params, coeff_vector, tile_n=4096)
    jax.block_until_ready((pred, time_deriv[0], sparse_theta[0], coeffs[0]))

    # sanity check against pure-JAX reference
    rpred, rtd, rtheta = reference_forward(x, params)
    assert jnp.allclose(pred, rpred, atol=1e-4, rtol=1e-4)
    assert jnp.allclose(time_deriv[0], rtd, atol=1e-4, rtol=1e-4)
    assert jnp.allclose(sparse_theta[0], rtheta, atol=1e-4, rtol=1e-4)

    print("KERNEL_OK")
</pallas_src>

<mosaic_0001>
module attributes {stable_mosaic.version = 11 : i64} {
  func.func @_deepmod_kernel(%arg0: i32, %arg1: memref<2x1024xf32, #tpu.memory_space<vmem>>, %arg2: memref<40x36xf32, #tpu.memory_space<vmem>>, %arg3: memref<8x1024xf32, #tpu.memory_space<vmem>>) attributes {dimension_semantics = [#tpu.dimension_semantics<parallel>], iteration_bounds = array<i64: 2>, scalar_prefetch = 0 : i64, scratch_operands = 0 : i64, tpu.core_type = #tpu.core_type<tc>, window_params = [{transform_indices = @transform_0, window_bounds = array<i64: 2, 1024>}, {pipeline_mode = #tpu.pipeline_mode<synchronous>, transform_indices = @transform_1, window_bounds = array<i64: 40, 36>}, {transform_indices = @transform_2, window_bounds = array<i64: 8, 1024>}]} {
    %c0 = arith.constant 0 : index
    %c0_0 = arith.constant 0 : index
    %0 = vector.load %arg1[%c0, %c0_0] : memref<2x1024xf32, #tpu.memory_space<vmem>>, vector<2x1024xf32>
    %c0_1 = arith.constant 0 : index
    %c0_2 = arith.constant 0 : index
    %1 = vector.load %arg2[%c0_1, %c0_2] : memref<40x36xf32, #tpu.memory_space<vmem>>, vector<32x32xf32>
    %c0_3 = arith.constant 0 : index
    %c32 = arith.constant 32 : index
    %2 = vector.load %arg2[%c0_3, %c32] : memref<40x36xf32, #tpu.memory_space<vmem>>, vector<32x1xf32>
    %c0_4 = arith.constant 0 : index
    %c33 = arith.constant 33 : index
    %3 = vector.load %arg2[%c0_4, %c33] : memref<40x36xf32, #tpu.memory_space<vmem>>, vector<32x1xf32>
    %c0_5 = arith.constant 0 : index
    %c34 = arith.constant 34 : index
    %4 = vector.load %arg2[%c0_5, %c34] : memref<40x36xf32, #tpu.memory_space<vmem>>, vector<32x1xf32>
    %c0_6 = arith.constant 0 : index
    %c35 = arith.constant 35 : index
    %5 = vector.load %arg2[%c0_6, %c35] : memref<40x36xf32, #tpu.memory_space<vmem>>, vector<32x1xf32>
    %c32_7 = arith.constant 32 : index
    %c0_8 = arith.constant 0 : index
    %6 = vector.load %arg2[%c32_7, %c0_8] : memref<40x36xf32, #tpu.memory_space<vmem>>, vector<8x32xf32>
    %c32_9 = arith.constant 32 : index
    %c32_10 = arith.constant 32 : index
    %7 = vector.load %arg2[%c32_9, %c32_10] : memref<40x36xf32, #tpu.memory_space<vmem>>, vector<1x1xf32>
    %8 = vector.extract_strided_slice %0 {offsets = [0, 0], sizes = [1, 1024], strides = [1, 1]} : vector<2x1024xf32> to vector<1x1024xf32>
    %9 = vector.extract_strided_slice %0 {offsets = [1, 0], sizes = [1, 1024], strides = [1, 1]} : vector<2x1024xf32> to vector<1x1024xf32>
    %10 = vector.broadcast %2 : vector<32x1xf32> to vector<32x1024xf32>
    %11 = vector.broadcast %8 : vector<1x1024xf32> to vector<32x1024xf32>
    %12 = arith.mulf %10, %11 : vector<32x1024xf32>
    %13 = vector.broadcast %3 : vector<32x1xf32> to vector<32x1024xf32>
    %14 = vector.broadcast %9 : vector<1x1024xf32> to vector<32x1024xf32>
    %15 = arith.mulf %13, %14 : vector<32x1024xf32>
    %16 = arith.addf %12, %15 : vector<32x1024xf32>
    %17 = vector.broadcast %4 : vector<32x1xf32> to vector<32x1024xf32>
    %18 = arith.addf %16, %17 : vector<32x1024xf32>
    %19 = math.tanh %18 : vector<32x1024xf32>
    %20 = arith.mulf %19, %19 : vector<32x1024xf32>
    %cst = arith.constant 1.000000e+00 : f32
    %21 = vector.broadcast %cst : f32 to vector<32x1024xf32>
    %22 = arith.subf %21, %20 : vector<32x1024xf32>
    %23 = vector.broadcast %2 : vector<32x1xf32> to vector<32x1024xf32>
    %24 = arith.mulf %22, %23 : vector<32x1024xf32>
    %25 = vector.broadcast %3 : vector<32x1xf32> to vector<32x1024xf32>
    %26 = arith.mulf %22, %25 : vector<32x1024xf32>
    %cst_11 = arith.constant dense<0.000000e+00> : vector<32x1024xf32>
    %27 = tpu.matmul %1, %19, %cst_11 {dimension_numbers = #tpu.dot_dimension_numbers<[1], [0], [0], [1], [0, 0, 1, 1], [], []>} : vector<32x32xf32>, vector<32x1024xf32>, vector<32x1024xf32> -> vector<32x1024xf32>
    %cst_12 = arith.constant dense<0.000000e+00> : vector<32x1024xf32>
    %28 = tpu.matmul %1, %24, %cst_12 {dimension_numbers = #tpu.dot_dimension_numbers<[1], [0], [0], [1], [0, 0, 1, 1], [], []>} : vector<32x32xf32>, vector<32x1024xf32>, vector<32x1024xf32> -> vector<32x1024xf32>
    %cst_13 = arith.constant dense<0.000000e+00> : vector<32x1024xf32>
    %29 = tpu.matmul %1, %26, %cst_13 {dimension_numbers = #tpu.dot_dimension_numbers<[1], [0], [0], [1], [0, 0, 1, 1], [], []>} : vector<32x32xf32>, vector<32x1024xf32>, vector<32x1024xf32> -> vector<32x1024xf32>
    %30 = vector.broadcast %5 : vector<32x1xf32> to vector<32x1024xf32>
    %31 = arith.addf %27, %30 : vector<32x1024xf32>
    %32 = math.tanh %31 : vector<32x1024xf32>
    %33 = arith.mulf %32, %32 : vector<32x1024xf32>
    %cst_14 = arith.constant 1.000000e+00 : f32
    %34 = vector.broadcast %cst_14 : f32 to vector<32x1024xf32>
    %35 = arith.subf %34, %33 : vector<32x1024xf32>
    %36 = arith.mulf %35, %28 : vector<32x1024xf32>
    %37 = arith.mulf %35, %29 : vector<32x1024xf32>
    %cst_15 = arith.constant dense<0.000000e+00> : vector<8x1024xf32>
    %38 = tpu.matmul %6, %32, %cst_15 {dimension_numbers = #tpu.dot_dimension_numbers<[1], [0], [0], [1], [0, 0, 1, 1], [], []>} : vector<8x32xf32>, vector<32x1024xf32>, vector<8x1024xf32> -> vector<8x1024xf32>
    %cst_16 = arith.constant dense<0.000000e+00> : vector<8x1024xf32>
    %39 = tpu.matmul %6, %36, %cst_16 {dimension_numbers = #tpu.dot_dimension_numbers<[1], [0], [0], [1], [0, 0, 1, 1], [], []>} : vector<8x32xf32>, vector<32x1024xf32>, vector<8x1024xf32> -> vector<8x1024xf32>
    %cst_17 = arith.constant dense<0.000000e+00> : vector<8x1024xf32>
    %40 = tpu.matmul %6, %37, %cst_17 {dimension_numbers = #tpu.dot_dimension_numbers<[1], [0], [0], [1], [0, 0, 1, 1], [], []>} : vector<8x32xf32>, vector<32x1024xf32>, vector<8x1024xf32> -> vector<8x1024xf32>
    %41 = vector.extract_strided_slice %38 {offsets = [0, 0], sizes = [1, 1024], strides = [1, 1]} : vector<8x1024xf32> to vector<1x1024xf32>
    %42 = vector.broadcast %7 : vector<1x1xf32> to vector<1x1024xf32>
    %43 = arith.addf %41, %42 : vector<1x1024xf32>
    %44 = vector.extract_strided_slice %39 {offsets = [0, 0], sizes = [1, 1024], strides = [1, 1]} : vector<8x1024xf32> to vector<1x1024xf32>
    %45 = vector.extract_strided_slice %40 {offsets = [0, 0], sizes = [1, 1024], strides = [1, 1]} : vector<8x1024xf32> to vector<1x1024xf32>
    %46 = arith.mulf %43, %43 : vector<1x1024xf32>
    %c0_18 = arith.constant 0 : index
    %c0_19 = arith.constant 0 : index
    %47 = vector.load %arg3[%c0_18, %c0_19] : memref<8x1024xf32, #tpu.memory_space<vmem>>, vector<1x1024xf32>
    tpu.vector_store %arg3[%c0_18, %c0_19], %43 {strides = array<i32>} : memref<8x1024xf32, #tpu.memory_space<vmem>>, vector<1x1024xf32>,
    %c1 = arith.constant 1 : index
    %c0_20 = arith.constant 0 : index
    %48 = vector.load %arg3[%c1, %c0_20] : memref<8x1024xf32, #tpu.memory_space<vmem>>, vector<1x1024xf32>
    tpu.vector_store %arg3[%c1, %c0_20], %44 {strides = array<i32>} : memref<8x1024xf32, #tpu.memory_space<vmem>>, vector<1x1024xf32>,
    %cst_21 = arith.constant 1.000000e+00 : f32
    %49 = vector.broadcast %cst_21 : f32 to vector<1x1024xf32>
    %c2 = arith.constant 2 : index
    %c0_22 = arith.constant 0 : index
    %50 = vector.load %arg3[%c2, %c0_22] : memref<8x1024xf32, #tpu.memory_space<vmem>>, vector<1x1024xf32>
    tpu.vector_store %arg3[%c2, %c0_22], %49 {strides = array<i32>} : memref<8x1024xf32, #tpu.memory_space<vmem>>, vector<1x1024xf32>,
    %c3 = arith.constant 3 : index
    %c0_23 = arith.constant 0 : index
    %51 = vector.load %arg3[%c3, %c0_23] : memref<8x1024xf32, #tpu.memory_space<vmem>>, vector<1x1024xf32>
    tpu.vector_store %arg3[%c3, %c0_23], %45 {strides = array<i32>} : memref<8x1024xf32, #tpu.memory_space<vmem>>, vector<1x1024xf32>,
    %c4 = arith.constant 4 : index
    %c0_24 = arith.constant 0 : index
    %52 = vector.load %arg3[%c4, %c0_24] : memref<8x1024xf32, #tpu.memory_space<vmem>>, vector<1x1024xf32>
    tpu.vector_store %arg3[%c4, %c0_24], %43 {strides = array<i32>} : memref<8x1024xf32, #tpu.memory_space<vmem>>, vector<1x1024xf32>,
    %53 = arith.mulf %43, %45 : vector<1x1024xf32>
    %c5 = arith.constant 5 : index
    %c0_25 = arith.constant 0 : index
    %54 = vector.load %arg3[%c5, %c0_25] : memref<8x1024xf32, #tpu.memory_space<vmem>>, vector<1x1024xf32>
    tpu.vector_store %arg3[%c5, %c0_25], %53 {strides = array<i32>} : memref<8x1024xf32, #tpu.memory_space<vmem>>, vector<1x1024xf32>,
    %c6 = arith.constant 6 : index
    %c0_26 = arith.constant 0 : index
    %55 = vector.load %arg3[%c6, %c0_26] : memref<8x1024xf32, #tpu.memory_space<vmem>>, vector<1x1024xf32>
    tpu.vector_store %arg3[%c6, %c0_26], %46 {strides = array<i32>} : memref<8x1024xf32, #tpu.memory_space<vmem>>, vector<1x1024xf32>,
    %56 = arith.mulf %46, %45 : vector<1x1024xf32>
    %c7 = arith.constant 7 : index
    %c0_27 = arith.constant 0 : index
    %57 = vector.load %arg3[%c7, %c0_27] : memref<8x1024xf32, #tpu.memory_space<vmem>>, vector<1x1024xf32>
    tpu.vector_store %arg3[%c7, %c0_27], %56 {strides = array<i32>} : memref<8x1024xf32, #tpu.memory_space<vmem>>, vector<1x1024xf32>,
    return
  }
  func.func @transform_0(%arg0: i32) -> (i32, i32) {
    %c0_i32 = arith.constant 0 : i32
    %c0_i32_0 = arith.constant 0 : i32
    return %c0_i32, %arg0 : i32, i32
  }
  func.func @transform_1(%arg0: i32) -> (i32, i32) {
    %c0_i32 = arith.constant 0 : i32
    %c0_i32_0 = arith.constant 0 : i32
    %c0_i32_1 = arith.constant 0 : i32
    return %c0_i32, %c0_i32_0 : i32, i32
  }
  func.func @transform_2(%arg0: i32) -> (i32, i32) {
    %c0_i32 = arith.constant 0 : i32
    %c0_i32_0 = arith.constant 0 : i32
    return %c0_i32, %arg0 : i32, i32
  }
}

</mosaic_0001>

<bundles_post_ra>
// kernel: tpu_custom_call.1
= control target key start
LH: loop header
LB: loop body
LE: loop exit
PB: predicated region body
PF: predicated region fallthrough
CT: control target
= control target key end

     0   :  { %7 = vsyncpa [#allocation3], 0  ;;  %s5561_s0 = inlined_call_operand.hbm [shape: f32[2,2048], index: 0, kind: input, shape index: {}]   ;;  %s5562_s1 = inlined_call_operand.hbm [shape: f32[40,36], index: 1, kind: input, shape index: {}]   ;;  %s5563_s2 = inlined_call_operand.hbm [shape: f32[8,2048], index: 2, kind: output, shape index: {}]  }
   0x1   :  { %9 = vsyncpa [#allocation3 + $0x1], 0 }
   0x2   :  { %10 = vsyncpa [#allocation6], 0 }
   0x3   :  { %11 = vsyncpa [#allocation4], 0 }
   0x4   :  { %13 = vsyncpa [#allocation4 + $0x1], 0  ;;  %s3735_s9 = smov 0   ;;  %s3737_s10 = smov 0  }
   0x5   :  { %s3739_s11 = smov 0   ;;  %s3741_s12 = smov 0  }
   0x6 LB: > { %s3756_s13 = sadd.s32 4294967295, %s3706_s12   ;;  %s3282_s14 = sadd.s32 4294967294, %s3706_s12   ;;  %s3706_s12 = sphi %s3741_s12, %s5860_s12   ;;  %s3702_s11 = sphi %s3739_s11, %s5859_s11   ;;  %s3698_s10 = sphi %s3737_s10, %s5858_s10   ;;  %s3694_s9 = sphi %s3735_s9, %s5857_s9  }
   0x7   : > { %p39_p0 = scmp.ne.s32.totalorder %s3698_s10, %s3694_s9  ;;  %p5564_p1 = scmp.eq.s32.totalorder %s3756_s13, 0 }
   0x8   : > { %p90_p3 = scmp.eq.s32.totalorder %s3282_s14, 1  ;;  %p3283_p5 = scmp.ge.s32.totalorder %s3706_s12, 1 }
   0x9   : > { %p3765_p4 = por %p5564_p1, %p39_p0  ;;  %p97_p7 = scmp.lt.s32.totalorder %s3706_s12, 3 }
   0xa   : > { %p3770_p6 = por %p90_p3, %p39_p0  ;;  %s3708_s18 = smov [#allocation5]  }
   0xb   : > { %s5613_s15 = scalar_select %p3765_p4, 1, 0 }
   0xc   : > { %s5614_s16 = scalar_select %p3770_p6, 1, 0 }
   0xd   : > { %p3775_p8 = pnand %p3283_p5, %p97_p7  ;;  %s109_s19 = sshll.u32 %s3708_s18, 4  ;;  %s110_s19 = int_to_ptr.vmem [resolvable:$true] %s109_s19 }
   0xe   : > { %s3789_s21 = sadd.s32 1, %s3706_s12   ;;  %s26_s22 = sadd.s32 1, %s3702_s11 }
   0xf   : > { %s5615_s17 = scalar_select %p3775_p8, 1, 0 }
  0x10   : > { %p3382_p9 = pneg %p3775_p8  ;;  %s23_s23 = ssub.s32 %s3706_s12, %s3789_s21 }
  0x11   : > { %s3595_s24 = scalar_lea.vmem %s110_s19, 640  ;;  %p3603_p5 = scmp.lt.s32.totalorder %s110_s19, %s110_s19 }
  0x12   : > { %p3784_p11 = pnand %p3382_p9, %p5564_p1  ;;  %p3596_p13 = scmp.ne.s32.totalorder %s110_s19, %s3595_s24 }
  0x13   : > { %p3604_p7 = scmp.lt.s32.totalorder %s3595_s24, %s3595_s24 }
  0x14   : > { %p3586_p12 = pneg %p3784_p11 }
  0x15   : > { %p3605_p10 = por %p3604_p7, %p3603_p5 }
  0x16   : > { %p3598_p0 = pnand %p3596_p13, %p3586_p12 }
  0x18   : > { %p3599_p3 = pneg %p3598_p0 }
  0x1a   : > { %p3606_p2 = pnand %p3605_p10, %p3599_p3 }
  0x1c   : > { %3609 = shalt.err (!%p3606_p2)
}
  0x1d   : > { %s3709_s25 = smov 128   ;;  %s3710_s26 = smov 8  }
  0x1e   : > { %3385 = dma.hbm_to_vmem [thread:$0]  (!%p3784_p11), %s5562_s1, 640, %s110_s19, [#allocation6], %s3709_s25, %s3709_s25, %s3710_s26  }
  0x1f   : > { %p24_p9 = scmp.eq.s32.totalorder %s23_s23, 0  ;;  %p33_p12 = scmp.ne.s32.totalorder %s3702_s11, %s3698_s10 }
  0x20   : > { %p34_p10 = scmp.eq.s32.totalorder %s3706_s12, 0  ;;  %p3395_p2 = scmp.lt.s32.totalorder %s3706_s12, 2 }
  0x21   : > { %s3806_s29 = scalar_select %p24_p9, %s3702_s11, %s26_s22  }
  0x22   : > { %p35_p13 = por %p34_p10, %p33_p12  ;;  %p5617_p0 = scmp.eq.s32.totalorder %s3756_s13, 1 }
  0x23   : > { %s123_s3 = sand.u32 1, %s3702_s11   ;;  %s3372_s4 = sshll.u32 %s3706_s12, 8 }
  0x24   : > { %p3810_p3 = por %p5617_p0, %p33_p12  ;;  %s3286_s5 = sshll.u32 %s123_s3, 4 }
  0x25   : > { %s3819_s8 = scalar_lea.hbm %s5561_s0, %s3372_s4  ;;  %s127_s14 = scalar_lea.vmem [#allocation2], %s3286_s5 }
  0x26   : > { %s5618_s30 = scalar_select %p3810_p3, 1, 0 }
  0x27   : > { %s135_s18 = sshll.u32 %s127_s14, 4  ;;  %p3821_p11 = pnand %p3395_p2, %p35_p13  ;;  %s136_s18 = int_to_ptr.vmem [resolvable:$true] %s135_s18 }
  0x28   : > { %s124_s20 = scalar_lea.sflag [#allocation3], %s123_s3  ;;  %s3610_s22 = scalar_lea.hbm %s3819_s8, 256 }
  0x29   : > { %p3611_p5 = scmp.ne.s32.totalorder %s3819_s8, %s3610_s22  ;;  %p3612_p7 = pneg %p3821_p11 }
  0x2a   : > { %s3615_s25 = scalar_lea.hbm %s5561_s0, 512  ;;  %p3616_p10 = scmp.lt.s32.totalorder %s3819_s8, %s5561_s0 }
  0x2b   : > { %p3613_p9 = pnand %p3612_p7, %p3611_p5  ;;  %p3617_p2 = scmp.lt.s32.totalorder %s3615_s25, %s3610_s22 }
  0x2d   : > { %p3614_p12 = pneg %p3613_p9  ;;  %p3618_p13 = por %p3617_p2, %p3616_p10 }
  0x2f   : > { %p3619_p0 = pnand %p3618_p13, %p3614_p12 }
  0x31   : > { %3622 = shalt.err (!%p3619_p0)
}
  0x32   : > { %s3623_s28 = scalar_lea.vmem %s136_s18, 256  ;;  %s3711_s3 = smov [#allocation2]  }
  0x33   : > { %p3624_p1 = scmp.ne.s32.totalorder %s136_s18, %s3623_s28  ;;  %s3628_s4 = sshll.u32 %s3711_s3, 4  ;;  %s3629_s4 = int_to_ptr.vmem [resolvable:$false] %s3628_s4 }
  0x34   : > { %s3630_s5 = scalar_lea.vmem %s3629_s4, 512  ;;  %p3631_p5 = scmp.lt.s32.totalorder %s136_s18, %s3629_s4 }
  0x35   : > { %p3626_p6 = pnand %p3624_p1, %p3612_p7  ;;  %p3632_p9 = scmp.lt.s32.totalorder %s3630_s5, %s3623_s28 }
  0x37   : > { %p3627_p3 = pneg %p3626_p6  ;;  %p3633_p4 = por %p3632_p9, %p3631_p5 }
  0x39   : > { %p3634_p8 = pnand %p3633_p4, %p3627_p3 }
  0x3b   : > { %3637 = shalt.err (!%p3634_p8)
}
  0x3c   : > { %3389 = dma.hbm_to_vmem [thread:$0]  (!%p3821_p11), %s3819_s8, 256, %s136_s18, %s124_s20  }
  0x3d   : > { %p5620_p12 = scmp.ne.s32.totalorder %s5615_s17, 0 }
  0x3f   : > { %144 = sbr.rel (%p5620_p12) target bundleno = 859 (0x35b), region = 28 }
  0x44   : > { %s3842_s6 = sand.u32 1, %s3698_s10   ;;  %p5621_p1 = scmp.ne.s32.totalorder %s5613_s15, 0 }
  0x45   : > { %s3290_s7 = sshll.u32 %s3842_s6, 4  ;;  %s147_s14 = scalar_lea.sflag [#allocation3], %s3842_s6 }
  0x46   : > { %s3846_s22 = scalar_lea.vmem [#allocation2], %s3290_s7 }
  0x47   : > { %3681 = dma.done.wait (%p5621_p1), %s147_s14, 256  }
  0x48   : > { %3683 = vsyncadd (%p5621_p1), %s147_s14, 4294967040  ;;  %p5622_p4 = scmp.eq.s32.totalorder %s3756_s13, 0 }
  0x4a   : > { %3685 = dma.done.wait (%p5622_p4), [#allocation6], 640   ;;  %p5623_p6 = pmov %p5622_p4 }
  0x4b   : > { %v3712_v0 = vmov 33   ;;  %v5568_v1 = vmov 32   ;;  %v3857_v2 = vld [vmem:[#allocation5 + $0x18] sm:$0xff]  ;;  %v3859_v3 = vld [vmem:[#allocation5 + $0x10] sm:$0xff]  ;;  %v3863_v4 = vld [vmem:[#allocation5 + $0x8] sm:$0xff]  ;;  %v3714_v6 = vmov 34   ;;  %v207_v8 = vlaneseq }
  0x4c   : > { %3687 = vsyncadd (%p5623_p6), [#allocation6], 4294966656  ;;  %3440 = vset.pattern.permute.xlu0 %v3712_v0  ;;  %3441 = vset.pattern.permute.xlu1 %v5568_v1  ;;  %5624 = vst [vmem:[#allocation11_spill] sm:$0xff] %v3857_v2  ;;  %v3871_v5 = vld [vmem:[#allocation5] sm:$0xff]  ;;  %v5569_v7 = vmov 0.0   ;;  %v178_v17 = vld [vmem:[%s3846_s22 + $0x8] sm:$0xff] }
  0x4d   : > { %5625 = vst [vmem:[#allocation12_spill] sm:$0xff] %v3859_v3  ;;  %324 = vperm.xlu0 %3440, %v3857_v2   ;;  %197 = vperm.xlu1 %3441, %v3859_v3   ;;  %5626 = vst [vmem:[#allocation13_spill] sm:$0xff] %v3863_v4  ;;  %v3883_v10 = vshrl.u32 %v207_v8, 7  ;;  %v177_v20 = vld [vmem:[%s3846_s22] sm:$0xff]  ;;  %vm671_vm0 = vcmask 261120   ;;  %s3292_s15 = sshll.u32 %s3842_s6, 6 }
  0x4e   : > { %5627 = vst [vmem:[#allocation14_spill] sm:$0xff] %v3871_v5  ;;  %744 = vmatprep.mubr.f32.mxu0 %v5569_v7  ;;  %833 = vmatprep.mubr.f32.mxu1 %v5569_v7  ;;  %s5376_s17 = scalar_lea.vmem [#allocation7], %s3292_s15  ;;  %s3373_s8 = sshll.u32 %s3756_s13, 10 }
  0x4f   : > { %5629 = vst [vmem:[#allocation16_spill] sm:$0xff] %v3883_v10  ;;  %v209_v12 = vsub.s32 0, %v3883_v10  ;;  %v213_v13 = vsub.s32 2, %v3883_v10  ;;  %v217_v15 = vsub.s32 4, %v3883_v10  ;;  %v221_v16 = vsub.s32 6, %v3883_v10  ;;  %s3202_s18 = sshll.u32 %s5376_s17, 4  ;;  %s5514_s23 = scalar_lea.hbm %s5563_s2, %s3373_s8  ;;  %s5516_s18 = int_to_ptr.vmem [resolvable:$true] %s3202_s18 }
  0x50   : > { %v329_v18 = vsub.s32 1, %v3883_v10  ;;  %v333_v19 = vsub.s32 3, %v3883_v10  ;;  %v337_v21 = vsub.s32 5, %v3883_v10  ;;  %v341_v22 = vsub.s32 7, %v3883_v10  ;;  %s3188_s13 = scalar_lea.sflag [#allocation4], %s3842_s6  ;;  %s3638_s24 = scalar_lea.vmem %s5516_s18, 1024 }
  0x51   : > { %3442 = vset.pattern.permute.xlu1 %v3712_v0  ;;  %316 = vperm.xlu0 %3440, %v3863_v4   ;;  %v226_v24 = vrot.slane %v178_v17, %v209_v12  ;;  %v230_v25 = vrot.slane %v178_v17, %v213_v13  ;;  %v234_v26 = vrot.slane %v178_v17, %v217_v15  ;;  %p3639_p8 = scmp.ne.s32.totalorder %s5516_s18, %s3638_s24  ;;  %p5854_p3 = scmp.ne.s32.totalorder %s5618_s30, 0 }
  0x52   : > { %320 = vperm.xlu1 %3442, %v3859_v3   ;;  %v238_v27 = vrot.slane %v178_v17, %v221_v16  ;;  %v210_v28 = vrot.slane %v177_v20, %v209_v12  ;;  %v214_v29 = vrot.slane %v177_v20, %v213_v13  ;;  %v346_v30 = vrot.slane %v178_v17, %v329_v18  ;;  %s3719_s25 = smov [#allocation7]  }
  0x53   : > { %v350_v31 = vrot.slane %v178_v17, %v333_v19  ;;  %v218_v32 = vrot.slane %v177_v20, %v217_v15  ;;  %v222_v33 = vrot.slane %v177_v20, %v221_v16  ;;  %v354_v35 = vrot.slane %v178_v17, %v337_v21  ;;  %p3640_p11 = pnand %p3639_p8, %p5854_p3  ;;  %s3642_s26 = sshll.u32 %s3719_s25, 4  ;;  %s3643_s26 = int_to_ptr.vmem [resolvable:$false] %s3642_s26 }
  0x54   : > { %v358_v36 = vrot.slane %v178_v17, %v341_v22  ;;  %v330_v37 = vrot.slane %v177_v20, %v329_v18  ;;  %v334_v38 = vrot.slane %v177_v20, %v333_v19  ;;  %v3903_v39 = vrot.slane %v226_v24, %v209_v12  ;;  %s3644_s27 = scalar_lea.vmem %s3643_s26, 2048  ;;  %p3645_p10 = scmp.lt.s32.totalorder %s5516_s18, %s3643_s26 }
  0x55   : > { %3444 = vset.pattern.permute.xlu0 %v5568_v1  ;;  %v3905_v40 = vrot.slane %v230_v25, %v209_v12  ;;  %v338_v41 = vrot.slane %v177_v20, %v337_v21  ;;  %v342_v42 = vrot.slane %v177_v20, %v341_v22  ;;  %v3907_v43 = vrot.slane %v234_v26, %v209_v12  ;;  %p3641_p7 = pneg %p3640_p11  ;;  %p3646_p2 = scmp.lt.s32.totalorder %s3644_s27, %s3638_s24 }
  0x56   : > { %3443 = vset.pattern.permute.xlu1 %v5568_v1  ;;  %202 = vperm.xlu0 %3444, %v3857_v2   ;;  %5632 = vst [vmem:[#allocation19_spill] sm:$0xff] %v3903_v39  ;;  %v3909_v44 = vrot.slane %v238_v27, %v209_v12  ;;  %v3911_v45 = vrot.slane %v210_v28, %v209_v12 }
  0x57   : > { %192 = vperm.xlu1 %3443, %v3863_v4   ;;  %v3913_v46 = vrot.slane %v214_v29, %v209_v12  ;;  %v3917_v48 = vrot.slane %v346_v30, %v329_v18  ;;  %v3919_v49 = vrot.slane %v350_v31, %v329_v18  ;;  %v3921_v50 = vrot.slane %v218_v32, %v209_v12  ;;  %p3647_p13 = por %p3646_p2, %p3645_p10 }
  0x58   : > { %v3923_v51 = vrot.slane %v222_v33, %v209_v12  ;;  %v3925_v52 = vrot.slane %v354_v35, %v329_v18  ;;  %v3927_v53 = vrot.slane %v358_v36, %v329_v18  ;;  %v3929_v54 = vrot.slane %v330_v37, %v329_v18 }
  0x59   : > { %v3931_v55 = vrot.slane %v334_v38, %v329_v18  ;;  %v3937_v58 = vrot.slane %v338_v41, %v329_v18  ;;  %v3939_v59 = vrot.slane %v342_v42, %v329_v18  ;;  %p3648_p0 = pnand %p3647_p13, %p3641_p7 }
  0x5a   : > { %187 = vperm.xlu0 %3444, %v3871_v5  }
  0x5b   : > { %3445 = vset.pattern.permute.xlu1 %v3714_v6 }
  0x5c   : > { %476 = vperm.xlu1 %3445, %v3857_v2  }
  0x5e   : > { %3448 = vset.pattern.permute.xlu0 %v3714_v6 }
  0x5f   : > { %468 = vperm.xlu0 %3448, %v3863_v4  }
  0x60   : > { %3446 = vset.pattern.permute.xlu1 %v3712_v0 }
  0x61   : > { %312 = vperm.xlu1 %3446, %v3871_v5  }
  0x65   : > { %3447 = vset.pattern.permute.xlu1 %v3714_v6 }
  0x66   : > { %472 = vperm.xlu1 %3447, %v3859_v3  }
  0x6a   : > { %464 = vperm.xlu1 %3447, %v3871_v5  }
  0xc8   : > { %v3881_v9 = vpop.permute.xlu1 %197  ;;  %v3885_v11 = vpop.permute.xlu0 %324 }
  0xc9   : > { %5628 = vst [vmem:[#allocation15_spill] sm:$0xff] %v3881_v9  ;;  %5630 = vst [vmem:[#allocation17_spill] sm:$0xff] %v3885_v11  ;;  %v427_v56 = vmul.f32 %v3917_v48, %v3885_v11  ;;  %v428_v57 = vmul.f32 %v3919_v49, %v3885_v11  ;;  %v429_v61 = vmul.f32 %v3925_v52, %v3885_v11 }
  0xca   : > { %v430_v62 = vmul.f32 %v3927_v53, %v3885_v11  ;;  %v295_v63 = vmul.f32 %v3911_v45, %v3881_v9  ;;  %v296_v0 = vmul.f32 %v3913_v46, %v3881_v9  ;;  %v297_v6 = vmul.f32 %v3921_v50, %v3881_v9 }
  0xcb   : > { %v298_v8 = vmul.f32 %v3923_v51, %v3881_v9  ;;  %v3957_v12 = vmul.f32 %v3903_v39, %v3881_v9  ;;  %v3961_v13 = vmul.f32 %v3905_v40, %v3881_v9  ;;  %v3967_v16 = vmul.f32 %v3907_v43, %v3881_v9 }
  0xcc   : > { %v3899_v23 = vpop.permute.xlu0 %316  ;;  %v3971_v17 = vmul.f32 %v3909_v44, %v3881_v9  ;;  %v3975_v18 = vmul.f32 %v3931_v55, %v3885_v11  ;;  %v3983_v21 = vmul.f32 %v3939_v59, %v3885_v11  ;;  %v3987_v22 = vmul.f32 %v3929_v54, %v3885_v11 }
  0xcd   : > { %v3889_v14 = vpop.permute.xlu1 %320  ;;  %5631 = vst [vmem:[#allocation18_spill] sm:$0xff] %v3899_v23  ;;  %5633 = vst [vmem:[#allocation20_spill] sm:$0xff] %v3961_v13  ;;  %v3991_v24 = vmul.f32 %v3937_v58, %v3885_v11  ;;  %v407_v26 = vmul.f32 %v3929_v54, %v3899_v23  ;;  %v408_v27 = vmul.f32 %v3931_v55, %v3899_v23 }
  0xce   : > { %5634 = vst [vmem:[#allocation21_spill] sm:$0xff] %v3967_v16  ;;  %5635 = vst [vmem:[#allocation22_spill] sm:$0xff] %v3971_v17  ;;  %v409_v28 = vmul.f32 %v3937_v58, %v3899_v23  ;;  %v410_v30 = vmul.f32 %v3939_v59, %v3899_v23  ;;  %v411_v31 = vmul.f32 %v3917_v48, %v3899_v23 }
  0xcf   : > { %v4009_v32 = vmul.f32 %v3919_v49, %v3899_v23  ;;  %v4015_v36 = vmul.f32 %v3925_v52, %v3899_v23  ;;  %v4019_v37 = vmul.f32 %v3927_v53, %v3899_v23  ;;  %v417_v23 = vmul.f32 %v3937_v58, %v3889_v14 }
  0xd0   : > { %v418_v11 = vmul.f32 %v3939_v59, %v3889_v14  ;;  %v4046_v4 = vmul.f32 %v3917_v48, %v3889_v14 }
  0xd1   : > { %v3915_v47 = vpop.permute.xlu0 %202 }
  0xd2   : > { %v3901_v34 = vpop.permute.xlu1 %192  ;;  %v307_v15 = vmul.f32 %v3903_v39, %v3915_v47  ;;  %v308_v20 = vmul.f32 %v3905_v40, %v3915_v47  ;;  %v309_v25 = vmul.f32 %v3907_v43, %v3915_v47  ;;  %v310_v29 = vmul.f32 %v3909_v44, %v3915_v47 }
  0xd3   : > { %v287_v35 = vmul.f32 %v3911_v45, %v3901_v34  ;;  %v288_v42 = vmul.f32 %v3913_v46, %v3901_v34  ;;  %v289_v10 = vmul.f32 %v3921_v50, %v3901_v34  ;;  %v290_v3 = vmul.f32 %v3923_v51, %v3901_v34 }
  0xd4   : > { %v459_v33 = vadd.f32 %v427_v56, %v307_v15  ;;  %v460_v41 = vadd.f32 %v428_v57, %v308_v20  ;;  %v415_v56 = vmul.f32 %v3929_v54, %v3889_v14  ;;  %v416_v15 = vmul.f32 %v3931_v55, %v3889_v14 }
  0xd5   : > { %v3977_v19 = vpop.permute.xlu0 %187  ;;  %v461_v1 = vadd.f32 %v429_v61, %v309_v25  ;;  %v462_v2 = vadd.f32 %v430_v62, %v310_v29  ;;  %v291_v25 = vmul.f32 %v3903_v39, %v3901_v34  ;;  %v440_v29 = vadd.f32 %v408_v27, %v288_v42 }
  0xd6   : > { %v448_v5 = vadd.f32 %v416_v15, %v296_v0  ;;  %v441_v9 = vadd.f32 %v409_v28, %v289_v10  ;;  %v442_v13 = vadd.f32 %v410_v30, %v290_v3  ;;  %v292_v39 = vmul.f32 %v3905_v40, %v3901_v34 }
  0xd7   : > { %v3941_v60 = vpop.permute.xlu1 %476  ;;  %v279_v10 = vmul.f32 %v3911_v45, %v3977_v19  ;;  %v304_v30 = vmul.f32 %v3913_v46, %v3915_v47 }
  0xd8   : > { %v507_v7 = vadd.f32 %v3941_v60, %v459_v33  ;;  %v508_v57 = vadd.f32 %v3941_v60, %v460_v41  ;;  %v509_v61 = vadd.f32 %v3941_v60, %v461_v1  ;;  %v439_v33 = vadd.f32 %v407_v26, %v287_v35 }
  0xd9   : > { %v510_v62 = vadd.f32 %v3941_v60, %v462_v2  ;;  %v447_v41 = vadd.f32 %v415_v56, %v295_v63  ;;  %v449_v1 = vadd.f32 %v417_v23, %v297_v6  ;;  %v450_v35 = vadd.f32 %v418_v11, %v298_v8 }
  0xda   : > { %v4035_v20 = vpop.permute.xlu0 %468  ;;  %3452 = vtanh.f32 %v507_v7  ;;  %v443_v2 = vadd.f32 %v411_v31, %v291_v25  ;;  %v280_v11 = vmul.f32 %v3913_v46, %v3977_v19  ;;  %v281_v6 = vmul.f32 %v3921_v50, %v3977_v19 }
  0xdb   : > { %v487_v16 = vadd.f32 %v4035_v20, %v439_v33  ;;  %3454 = vtanh.f32 %v508_v57  ;;  %v488_v26 = vadd.f32 %v4035_v20, %v440_v29  ;;  %v489_v63 = vadd.f32 %v4035_v20, %v441_v9 }
  0xdc   : > { %v4021_v38 = vpop.permute.xlu1 %312  ;;  %3456 = vtanh.f32 %v509_v61  ;;  %v490_v7 = vadd.f32 %v4035_v20, %v442_v13  ;;  %v491_v3 = vadd.f32 %v4035_v20, %v443_v2  ;;  %v305_v46 = vmul.f32 %v3921_v50, %v3915_v47 }
  0xdd   : > { %3458 = vtanh.f32 %v510_v62  ;;  %v399_v23 = vmul.f32 %v3929_v54, %v4021_v38  ;;  %v400_v0 = vmul.f32 %v3931_v55, %v4021_v38  ;;  %v401_v8 = vmul.f32 %v3937_v58, %v4021_v38 }
  0xde   : > { %3460 = vtanh.f32 %v487_v16  ;;  %v282_v16 = vmul.f32 %v3923_v51, %v3977_v19  ;;  %v402_v55 = vmul.f32 %v3939_v59, %v4021_v38  ;;  %v303_v59 = vmul.f32 %v3911_v45, %v3915_v47 }
  0xdf   : > { %3462 = vtanh.f32 %v488_v26  ;;  %v431_v28 = vadd.f32 %v399_v23, %v279_v10  ;;  %v432_v31 = vadd.f32 %v400_v0, %v280_v11  ;;  %v433_v42 = vadd.f32 %v401_v8, %v281_v6 }
  0xe0   : > { %3464 = vtanh.f32 %v489_v63  ;;  %v434_v15 = vadd.f32 %v402_v55, %v282_v16  ;;  %v293_v61 = vmul.f32 %v3907_v43, %v3901_v34  ;;  %v456_v25 = vadd.f32 %v3975_v18, %v304_v30  ;;  %v5642_v16 = vld [vmem:[#allocation21_spill] sm:$0xff]  ;;  %v5643_v30 = vld [vmem:[#allocation19_spill] sm:$0xff] }
  0xe1   : > { %v4050_v17 = vpop.permute.xlu1 %472  ;;  %3466 = vtanh.f32 %v490_v7  ;;  %v294_v33 = vmul.f32 %v3909_v44, %v3901_v34  ;;  %v420_v50 = vmul.f32 %v3919_v49, %v3889_v14  ;;  %v422_v18 = vmul.f32 %v3927_v53, %v3889_v14 }
  0xe2   : > { %v495_v9 = vadd.f32 %v4050_v17, %v447_v41  ;;  %v496_v54 = vadd.f32 %v4050_v17, %v448_v5  ;;  %v497_v27 = vadd.f32 %v4050_v17, %v449_v1  ;;  %3468 = vtanh.f32 %v491_v3 }
  0xe3   : > { %v498_v58 = vadd.f32 %v4050_v17, %v450_v35  ;;  %v306_v5 = vmul.f32 %v3923_v51, %v3915_v47  ;;  %v504_v41 = vadd.f32 %v3941_v60, %v456_v25  ;;  %v455_v1 = vadd.f32 %v3987_v22, %v303_v59 }
  0xe4   : > { %3470 = vtanh.f32 %v495_v9  ;;  %v444_v63 = vadd.f32 %v4009_v32, %v292_v39  ;;  %v421_v7 = vmul.f32 %v3925_v52, %v3889_v14  ;;  %v445_v23 = vadd.f32 %v4015_v36, %v293_v61  ;;  %v5640_v32 = vld [vmem:[#allocation20_spill] sm:$0xff]  ;;  %v5641_v36 = vld [vmem:[#allocation22_spill] sm:$0xff] }
  0xe5   : > { %v4072_v13 = vpop.permute.xlu1 %464  ;;  %3472 = vtanh.f32 %v496_v54  ;;  %v458_v62 = vadd.f32 %v3983_v21, %v306_v5  ;;  %v457_v21 = vadd.f32 %v3991_v24, %v305_v46  ;;  %v503_v22 = vadd.f32 %v3941_v60, %v455_v1 }
  0xe6   : > { %v479_v56 = vadd.f32 %v4072_v13, %v431_v28  ;;  %v480_v57 = vadd.f32 %v4072_v13, %v432_v31  ;;  %3474 = vtanh.f32 %v497_v27  ;;  %v481_v51 = vadd.f32 %v4072_v13, %v433_v42 }
  0xe7   : > { %3476 = vtanh.f32 %v498_v58  ;;  %v482_v45 = vadd.f32 %v4072_v13, %v434_v15  ;;  %v4098_v29 = vpop.eup %3452  ;;  %v506_v35 = vadd.f32 %v3941_v60, %v458_v62  ;;  %v446_v3 = vadd.f32 %v4019_v37, %v294_v33 }
  0xe8   : > { %5636 = vst [vmem:[#allocation23_spill] sm:$0xff] %v4098_v29  ;;  %3478 = vtanh.f32 %v479_v56  ;;  %v4104_v26 = vpop.eup %3454  ;;  %v505_v11 = vadd.f32 %v3941_v60, %v457_v21  ;;  %v492_v0 = vadd.f32 %v4035_v20, %v444_v63  ;;  %v451_v39 = vadd.f32 %v4046_v4, %v3957_v12 }
  0xe9   : > { %5637 = vst [vmem:[#allocation24_spill] sm:$0xff] %v4104_v26  ;;  %3480 = vtanh.f32 %v480_v57  ;;  %v4110_v2 = vpop.eup %3456  ;;  %v452_v9 = vadd.f32 %v420_v50, %v5640_v32  ;;  %v493_v8 = vadd.f32 %v4035_v20, %v445_v23  ;;  %v454_v54 = vadd.f32 %v422_v18, %v5641_v36 }
  0xea   : > { %5638 = vst [vmem:[#allocation25_spill] sm:$0xff] %v4110_v2  ;;  %3482 = vtanh.f32 %v481_v51  ;;  %v4116_v10 = vpop.eup %3458  ;;  %v403_v37 = vmul.f32 %v3917_v48, %v4021_v38  ;;  %v453_v55 = vadd.f32 %v421_v7, %v5642_v16  ;;  %v404_v4 = vmul.f32 %v3919_v49, %v4021_v38 }
  0xeb   : > { %5639 = vst [vmem:[#allocation26_spill] sm:$0xff] %v4116_v10  ;;  %3484 = vtanh.f32 %v482_v45  ;;  %v4121_v24 = vpop.eup %3460  ;;  %v500_v27 = vadd.f32 %v4050_v17, %v452_v9  ;;  %v502_v28 = vadd.f32 %v4050_v17, %v454_v54  ;;  %v283_v58 = vmul.f32 %v5643_v30, %v3977_v19 }
  0xec   : > { %3486 = vtanh.f32 %v504_v41  ;;  %v4127_v6 = vpop.eup %3462  ;;  %v406_v48 = vmul.f32 %v3927_v53, %v4021_v38  ;;  %v499_v5 = vadd.f32 %v4050_v17, %v451_v39  ;;  %v284_v49 = vmul.f32 %v3905_v40, %v3977_v19 }
  0xed   : > { %3488 = vtanh.f32 %v506_v35  ;;  %v4133_v60 = vpop.eup %3464  ;;  %v405_v42 = vmul.f32 %v3925_v52, %v4021_v38  ;;  %v501_v59 = vadd.f32 %v4050_v17, %v453_v55  ;;  %v286_v53 = vmul.f32 %v3909_v44, %v3977_v19 }
  0xee   : > { %3490 = vtanh.f32 %v503_v22  ;;  %v4139_v12 = vpop.eup %3466  ;;  %v435_v15 = vadd.f32 %v403_v37, %v283_v58  ;;  %v494_v46 = vadd.f32 %v4035_v20, %v446_v3  ;;  %v285_v40 = vmul.f32 %v3907_v43, %v3977_v19 }
  0xef   : > { %3492 = vtanh.f32 %v505_v11  ;;  %v4146_v31 = vpop.eup %3468  ;;  %v436_v61 = vadd.f32 %v404_v4, %v284_v49  ;;  %v438_v52 = vadd.f32 %v406_v48, %v286_v53  ;;  %v4171_v20 = vmul.f32 %v4127_v6, %v4127_v6 }
  0xf0   : > { %5644 = vst [vmem:[#allocation20_spill] sm:$0xff] %v4146_v31  ;;  %3494 = vtanh.f32 %v492_v0  ;;  %v483_v25 = vadd.f32 %v4072_v13, %v435_v15  ;;  %v437_v44 = vadd.f32 %v405_v42, %v285_v40  ;;  %v4178_v62 = vmul.f32 %v4121_v24, %v4121_v24 }
  0xf1   : > { %v4153_v56 = vpop.eup %3470  ;;  %3496 = vtanh.f32 %v493_v8  ;;  %v484_v33 = vadd.f32 %v4072_v13, %v436_v61  ;;  %v486_v43 = vadd.f32 %v4072_v13, %v438_v52  ;;  %v4189_v18 = vmul.f32 %v4139_v12, %v4139_v12  ;;  %v5649_v61 = vld [vmem:[#allocation15_spill] sm:$0xff] }
  0xf2   : > { %v4158_v57 = vpop.eup %3472  ;;  %3498 = vtanh.f32 %v500_v27  ;;  %v485_v41 = vadd.f32 %v4072_v13, %v437_v44  ;;  %v4185_v1 = vmul.f32 %v4153_v56, %v4153_v56  ;;  %v4206_v22 = vmul.f32 %v4104_v26, %v4104_v26 }
  0xf3   : > { %v4163_v51 = vpop.eup %3474  ;;  %3500 = vtanh.f32 %v502_v28  ;;  %v4195_v21 = vmul.f32 %v4158_v57, %v4158_v57  ;;  %v4210_v23 = vmul.f32 %v4116_v10, %v4116_v10  ;;  %v4221_v39 = vmul.f32 %v4133_v60, %v4133_v60 }
  0xf4   : > { %v4166_v17 = vpop.eup %3476  ;;  %3502 = vtanh.f32 %v499_v5  ;;  %v4216_v11 = vmul.f32 %v4163_v51, %v4163_v51  ;;  %v5588_v8 = vsub.f32 1.0, %v4185_v1 }
  0xf5   : > { %v4173_v45 = vpop.eup %3478  ;;  %3504 = vtanh.f32 %v501_v59  ;;  %v4199_v63 = vmul.f32 %v4166_v17, %v4166_v17  ;;  %v5590_v16 = vsub.f32 1.0, %v4195_v21 }
  0xf6   : > { %5645 = vst [vmem:[#allocation22_spill] sm:$0xff] %v4173_v45  ;;  %v4180_v50 = vpop.eup %3480  ;;  %3506 = vtanh.f32 %v494_v46  ;;  %v4256_v48 = vmul.f32 %v4173_v45, %v4173_v45  ;;  %v5594_v59 = vsub.f32 1.0, %v4216_v11  ;;  %v623_v52 = vmul.f32 %v5588_v8, %v5649_v61 }
  0xf7   : > { %v4191_v35 = vpop.eup %3482  ;;  %3508 = vtanh.f32 %v483_v25  ;;  %v5592_v55 = vsub.f32 1.0, %v4199_v63  ;;  %v4241_v27 = vmul.f32 %v4180_v50, %v4180_v50 }
  0xf8   : > { %5646 = vst [vmem:[#allocation21_spill] sm:$0xff] %v4191_v35  ;;  %v4201_v13 = vpop.eup %3484  ;;  %3510 = vtanh.f32 %v484_v33  ;;  %v4268_v53 = vmul.f32 %v4191_v35, %v4191_v35 }
  0xf9   : > { %v4212_v3 = vpop.eup %3486  ;;  %3512 = vtanh.f32 %v486_v43  ;;  %v4252_v58 = vmul.f32 %v4201_v13, %v4201_v13  ;;  %v626_v25 = vmul.f32 %v5592_v55, %v5649_v61  ;;  %v4311_v55 = vmul.f32 %v4098_v29, %v4098_v29 }
  0xfa   : > { %v4223_v32 = vpop.eup %3488  ;;  %3514 = vtanh.f32 %v485_v41  ;;  %v4227_v9 = vmul.f32 %v4212_v3, %v4212_v3  ;;  %v624_v41 = vmul.f32 %v5590_v16, %v5649_v61  ;;  %v5658_v10 = vsub.f32 1.0, %v4241_v27 }
  0xfb   : > { %v4231_v54 = vpop.eup %3490  ;;  %v4235_v37 = vmul.f32 %v4223_v32, %v4223_v32 }
  0xfc   : > { %v4243_v4 = vpop.eup %3492  ;;  %v5587_v28 = vsub.f32 1.0, %v4227_v9  ;;  %v4248_v30 = vmul.f32 %v4231_v54, %v4231_v54 }
  0xfd   : > { %v4258_v5 = vpop.eup %3494  ;;  %v5589_v49 = vsub.f32 1.0, %v4235_v37  ;;  %v4263_v42 = vmul.f32 %v4243_v4, %v4243_v4 }
  0xfe   : > { %5647 = vst [vmem:[#allocation19_spill] sm:$0xff] %v4258_v5  ;;  %v4270_v15 = vpop.eup %3496  ;;  %v632_v46 = vmul.f32 %v5587_v28, %v3915_v47  ;;  %v5591_v40 = vsub.f32 1.0, %v4248_v30 }
  0xff   : > { %5648 = vst [vmem:[#allocation27_spill] sm:$0xff] %v4270_v15  ;;  %v4280_v44 = vpop.eup %3498  ;;  %v634_v33 = vmul.f32 %v5589_v49, %v3915_v47  ;;  %v5593_v43 = vsub.f32 1.0, %v4263_v42 }
 0x100   : > { %5650 = vst [vmem:[#allocation15_spill] sm:$0xff] %v4280_v44  ;;  %v4290_v36 = vpop.eup %3500  ;;  %704 = vmatprep.subr.mxu0 %v632_v46  ;;  %v631_v8 = vmul.f32 %v5591_v40, %v3915_v47  ;;  %v625_v46 = vmul.f32 %v5594_v59, %v5649_v61  ;;  %v4323_v59 = vmul.f32 %v4110_v2, %v4110_v2 }
 0x101   : > { %5651 = vst [vmem:[#allocation28_spill] sm:$0xff] %v4290_v36  ;;  %v4300_v7 = vpop.eup %3502  ;;  %793 = vmatprep.subr.mxu1 %v634_v33  ;;  %v633_v16 = vmul.f32 %v5593_v43, %v3915_v47  ;;  %v5654_v33 = vsub.f32 1.0, %v4171_v20  ;;  %v5655_v43 = vsub.f32 1.0, %v4178_v62  ;;  %v4327_v40 = vmul.f32 %v4280_v44, %v4280_v44 }
 0x102   : > { %5652 = vst [vmem:[#allocation29_spill] sm:$0xff] %v4300_v7  ;;  %v4313_v49 = vpop.eup %3504  ;;  %705 = vmatpush1.msra.mxu0 %v631_v8  ;;  %v5657_v8 = vsub.f32 1.0, %v4189_v18  ;;  %v4340_v2 = vmul.f32 %v4290_v36, %v4290_v36  ;;  %v4353_v26 = vmul.f32 %v4300_v7, %v4300_v7 }
 0x103   : > { %5653 = vst [vmem:[#allocation30_spill] sm:$0xff] %v4313_v49  ;;  %v616_v0 = vmul.f32 %v5654_v33, %v3901_v34  ;;  %v615_v28 = vmul.f32 %v5655_v43, %v3901_v34  ;;  %v4329_v29 = vpop.eup %3506  ;;  %794 = vmatpush1.msra.mxu1 %v633_v16  ;;  %706 = vmatprep.subr.mxu0 %v624_v41  ;;  %v5659_v16 = vsub.f32 1.0, %v4252_v58 }
 0x104   : > { %5656 = vst [vmem:[#allocation31_spill] sm:$0xff] %v4329_v29  ;;  %v618_v33 = vmul.f32 %v5657_v8, %v3901_v34  ;;  %v608_v43 = vmul.f32 %v5658_v10, %v3977_v19  ;;  %v4342_v44 = vpop.eup %3508  ;;  %795 = vmatprep.subr.mxu1 %v626_v25  ;;  %707 = vmatpush1.msra.mxu0 %v623_v52  ;;  %v5660_v8 = vsub.f32 1.0, %v4256_v48  ;;  %v5662_v52 = vsub.f32 1.0, %v4221_v39 }
 0x105   : > { %v610_v41 = vmul.f32 %v5659_v16, %v3977_v19  ;;  %v4355_v36 = vpop.eup %3510  ;;  %796 = vmatpush1.msra.mxu1 %v625_v46  ;;  %708 = vmatprep.subr.mxu0 %v616_v0  ;;  %v5663_v16 = vsub.f32 1.0, %v4268_v53  ;;  %v4366_v10 = vmul.f32 %v4313_v49, %v4313_v49  ;;  %v4381_v49 = vmul.f32 %v4329_v29, %v4329_v29 }
 0x106   : > { %v607_v35 = vmul.f32 %v5660_v8, %v3977_v19  ;;  %5661 = vst [vmem:[#allocation32_spill] sm:$0xff] %v4355_v36  ;;  %v617_v25 = vmul.f32 %v5662_v52, %v3901_v34  ;;  %v4368_v7 = vpop.eup %3512  ;;  %797 = vmatprep.subr.mxu1 %v618_v33  ;;  %709 = vmatpush1.msra.mxu0 %v615_v28  ;;  %v5666_v33 = vsub.f32 1.0, %v4206_v22  ;;  %v5667_v8 = vld [vmem:[#allocation14_spill] sm:$0xff] }
 0x107   : > { %v609_v45 = vmul.f32 %v5663_v16, %v3977_v19  ;;  %5664 = vst [vmem:[#allocation33_spill] sm:$0xff] %v4368_v7  ;;  %v4374_v52 = vmul.f32 %v4258_v5, %v4258_v5  ;;  %v4376_v16 = vpop.eup %3514  ;;  %710 = vmatprep.subr.mxu0 %v608_v43  ;;  %v4385_v28 = vmul.f32 %v4146_v31, %v4146_v31 }
 0x108   : > { %5665 = vst [vmem:[#allocation34_spill] sm:$0xff] %v4376_v16  ;;  %798 = vmatpush1.msra.mxu1 %v617_v25  ;;  %711 = vmatpush1.msra.mxu0 %v607_v35  ;;  %v636_v46 = vmul.f32 %v5666_v33, %v3915_v47  ;;  %v4393_v43 = vmul.f32 %v4270_v15, %v4270_v15  ;;  %v5668_v35 = vsub.f32 1.0, %v4210_v23  ;;  %v5669_v33 = vsub.f32 1.0, %v4311_v55 }
 0x109   : > { %799 = vmatprep.subr.mxu1 %v610_v41  ;;  %v4397_v25 = vmul.f32 %v4355_v36, %v4355_v36  ;;  %3293 = vmatmul.mubr.msk.f32.vlgmr.msra.gmra.mxu0 %vm671_vm0, %v5667_v8  ;;  %v4410_v15 = vmul.f32 %v4368_v7, %v4368_v7  ;;  %v4423_v31 = vmul.f32 %v4342_v44, %v4342_v44  ;;  %v5672_v7 = vsub.f32 1.0, %v4340_v2 }
 0x10a   : > { %800 = vmatpush1.msra.mxu1 %v609_v45  ;;  %v638_v41 = vmul.f32 %v5668_v35, %v3915_v47  ;;  %v635_v0 = vmul.f32 %v5669_v33, %v3915_v47  ;;  %882 = vmatprep.subr.mxu0 %v636_v46  ;;  %v5670_v45 = vsub.f32 1.0, %v4323_v59  ;;  %v5671_v35 = vsub.f32 1.0, %v4327_v40 }
 0x10b   : > { %3297 = vmatmul.mubr.msk.f32.vlgmr.msra.gmra.mxu1 %vm671_vm0, %v5667_v8  ;;  %v630_v46 = vmul.f32 %v5672_v7, %v5649_v61  ;;  %v5674_v7 = vmov 0.0  }
 0x10c   : > { %v637_v36 = vmul.f32 %v5670_v45, %v3915_v47  ;;  %v628_v29 = vmul.f32 %v5671_v35, %v5649_v61  ;;  %971 = vmatprep.subr.mxu1 %v638_v41  ;;  %883 = vmatpush1.msra.mxu0 %v635_v0  ;;  %v4432_v45 = vmul.f32 %v4376_v16, %v4376_v16  ;;  %v5673_v35 = vsub.f32 1.0, %v4353_v26  ;;  %v5677_v41 = vld [vmem:[#allocation13_spill] sm:$0xff] }
 0x10d   : > { %750 = vmatprep.mubr.f32.mxu0 %v5674_v7  ;;  %v5675_v47 = vsub.f32 1.0, %v4366_v10  ;;  %839 = vmatprep.mubr.f32.mxu1 %v5674_v7 }
 0x10e   : > { %972 = vmatpush1.msra.mxu1 %v637_v36  ;;  %884 = vmatprep.subr.mxu0 %v628_v29  ;;  %v627_v33 = vmul.f32 %v5673_v35, %v5649_v61  ;;  %v5676_v29 = vsub.f32 1.0, %v4374_v52  ;;  %v5681_v35 = vsub.f32 1.0, %v4397_v25 }
 0x10f   : > { %973 = vmatprep.subr.mxu1 %v630_v46  ;;  %v629_v5 = vmul.f32 %v5675_v47, %v5649_v61  ;;  %3294 = vmatmul.mubr.msk.f32.gmra.mxu0 %vm671_vm0, %v5677_v41  ;;  %v5678_v46 = vsub.f32 1.0, %v4381_v49  ;;  %v5679_v61 = vsub.f32 1.0, %v4385_v28 }
 0x110   : > { %885 = vmatpush1.msra.mxu0 %v627_v33  ;;  %v620_v36 = vmul.f32 %v5676_v29, %v3901_v34  ;;  %3298 = vmatmul.mubr.msk.f32.gmra.mxu1 %vm671_vm0, %v5677_v41  ;;  %v612_v16 = vmul.f32 %v5681_v35, %v3977_v19  ;;  %v5683_v33 = vsub.f32 1.0, %v4423_v31  ;;  %v5686_v35 = vsub.f32 1.0, %v4227_v9  ;;  %v5689_v9 = vld [vmem:[#allocation11_spill] sm:$0xff] }
 0x111   : > { %974 = vmatpush1.msra.mxu1 %v629_v5  ;;  %v622_v0 = vmul.f32 %v5678_v46, %v3901_v34  ;;  %v619_v47 = vmul.f32 %v5679_v61, %v3901_v34  ;;  %v5680_v5 = vsub.f32 1.0, %v4393_v43  ;;  %v5682_v46 = vsub.f32 1.0, %v4410_v15  ;;  %756 = vmatprep.mubr.f32.mxu0 %v5674_v7 }
 0x112   : > { %886 = vmatprep.subr.mxu0 %v620_v36  ;;  %v611_v36 = vmul.f32 %v5683_v33, %v3977_v19  ;;  %845 = vmatprep.mubr.f32.mxu1 %v5674_v7  ;;  %v5688_v33 = vsub.f32 1.0, %v4235_v37  ;;  %v5690_v37 = vsub.f32 1.0, %v4248_v30  ;;  %v5693_v30 = vsub.f32 1.0, %v4199_v63 }
 0x113   : > { %v621_v29 = vmul.f32 %v5680_v5, %v3901_v34  ;;  %975 = vmatprep.subr.mxu1 %v622_v0  ;;  %887 = vmatpush1.msra.mxu0 %v619_v47  ;;  %v614_v61 = vmul.f32 %v5682_v46, %v3977_v19  ;;  %v5684_v34 = vsub.f32 1.0, %v4432_v45  ;;  %v5685_v0 = vld [vmem:[#allocation17_spill] sm:$0xff]  ;;  %v5698_v63 = vsub.f32 1.0, %v4189_v18 }
 0x114   : > { %888 = vmatprep.subr.mxu0 %v612_v16  ;;  %v664_v47 = vmul.f32 %v5686_v35, %v5685_v0  ;;  %v5687_v16 = vld [vmem:[#allocation12_spill] sm:$0xff]  ;;  %v663_v46 = vmul.f32 %v5690_v37, %v5685_v0  ;;  %v658_v35 = vmul.f32 %v5693_v30, %v3889_v14 }
 0x115   : > { %976 = vmatpush1.msra.mxu1 %v621_v29  ;;  %v613_v5 = vmul.f32 %v5684_v34, %v3977_v19  ;;  %889 = vmatpush1.msra.mxu0 %v611_v36  ;;  %v666_v29 = vmul.f32 %v5688_v33, %v5685_v0  ;;  %v3716_v19 = vmov 35   ;;  %v5692_v34 = vsub.f32 1.0, %v4195_v21 }
 0x116   : > { %977 = vmatprep.subr.mxu1 %v614_v61  ;;  %3295 = vmatmul.mubr.msk.f32.gmra.mxu0 %vm671_vm0, %v5687_v16  ;;  %v5691_v61 = vsub.f32 1.0, %v4263_v42  ;;  %v5694_v42 = vsub.f32 1.0, %v4185_v1  ;;  %v5695_v21 = vsub.f32 1.0, %v4216_v11  ;;  %v5699_v11 = vsub.f32 1.0, %v4178_v62 }
 0x117   : > { %978 = vmatpush1.msra.mxu1 %v613_v5  ;;  %1060 = vmatprep.subr.mxu0 %v664_v47  ;;  %v656_v5 = vmul.f32 %v5692_v34, %v3889_v14  ;;  %v5702_v62 = vsub.f32 1.0, %v4252_v58  ;;  %v5706_v58 = vsub.f32 1.0, %v4210_v23  ;;  %v5708_v23 = vsub.f32 1.0, %v4311_v55 }
 0x118   : > { %3299 = vmatmul.mubr.msk.f32.gmra.mxu1 %vm671_vm0, %v5687_v16  ;;  %1149 = vmatprep.subr.mxu1 %v666_v29  ;;  %v665_v36 = vmul.f32 %v5691_v61, %v5685_v0  ;;  %v655_v47 = vmul.f32 %v5694_v42, %v3889_v14  ;;  %v657_v33 = vmul.f32 %v5695_v21, %v3889_v14  ;;  %v5696_v29 = vld [vmem:[#allocation18_spill] sm:$0xff]  ;;  %v5710_v21 = vsub.f32 1.0, %v4327_v40 }
 0x119   : > { %762 = vmatprep.mubr.f32.mxu0 %v5674_v7  ;;  %851 = vmatprep.mubr.f32.mxu1 %v5674_v7  ;;  %v650_v1 = vmul.f32 %v5698_v63, %v5696_v29  ;;  %v642_v34 = vmul.f32 %v5702_v62, %v4021_v38  ;;  %v5714_v40 = vsub.f32 1.0, %v4374_v52  ;;  %v5717_v52 = vsub.f32 1.0, %v4393_v43 }
 0x11a   : > { %3449 = vset.pattern.permute.xlu1 %v3716_v19  ;;  %3296 = vmatmul.mubr.msk.f32.gmra.mxu0 %vm671_vm0, %v5689_v9  ;;  %v5721_v43 = vsub.f32 1.0, %v4432_v45  ;;  %v5736_v45 = vld [vmem:[#allocation32_spill] sm:$0xff] }
 0x11b   : > { %1405 = vperm.xlu1 %3449, %v5689_v9   ;;  %922 = vmatprep.mubr.f32.mxu0 %v5674_v7  ;;  %v653_v63 = vmul.f32 %v5717_v52, %v5696_v29 }
 0x11c   : > { %3300 = vmatmul.mubr.msk.f32.gmra.mxu1 %vm671_vm0, %v5689_v9  ;;  %3450 = vset.pattern.permute.xlu0 %v3716_v19  ;;  %v5697_v19 = vsub.f32 1.0, %v4171_v20  ;;  %v5700_v20 = vsub.f32 1.0, %v4221_v39  ;;  %v5704_v39 = vsub.f32 1.0, %v4268_v53  ;;  %v667_v53 = vmul.f32 %v5708_v23, %v5685_v0 }
 0x11d   : > { %1011 = vmatprep.mubr.f32.mxu1 %v5674_v7  ;;  %1401 = vperm.xlu0 %3450, %v5687_v16  }
 0x11e   : > { %3301 = vmatmul.mubr.msk.f32.vlgmr.msra.gmra.mxu0 %vm671_vm0, %v5667_v8  ;;  %v648_v37 = vmul.f32 %v5697_v19, %v5696_v29  ;;  %v649_v61 = vmul.f32 %v5700_v20, %v5696_v29  ;;  %v5712_v19 = vsub.f32 1.0, %v4353_v26 }
 0x11f   : > { %1397 = vperm.xlu1 %3449, %v5677_v41   ;;  %1061 = vmatpush1.msra.mxu0 %v663_v46  ;;  %v647_v46 = vmul.f32 %v5699_v11, %v5696_v29 }
 0x120   : > { %3305 = vmatmul.mubr.msk.f32.vlgmr.msra.gmra.mxu1 %vm671_vm0, %v5667_v8  ;;  %1062 = vmatprep.subr.mxu0 %v656_v5  ;;  %v5703_v5 = vsub.f32 1.0, %v4256_v48  ;;  %v670_v48 = vmul.f32 %v5706_v58, %v5685_v0 }
 0x121   : > { %1150 = vmatpush1.msra.mxu1 %v665_v36  ;;  %1063 = vmatpush1.msra.mxu0 %v655_v47  ;;  %v5701_v36 = vsub.f32 1.0, %v4241_v27  ;;  %v5705_v27 = vsub.f32 1.0, %v4206_v22  ;;  %v5707_v22 = vmov 32  }
 0x122   : > { %1151 = vmatprep.subr.mxu1 %v658_v35  ;;  %928 = vmatprep.mubr.f32.mxu0 %v5674_v7  ;;  %v639_v30 = vmul.f32 %v5703_v5, %v4021_v38  ;;  %v641_v35 = vmul.f32 %v5704_v39, %v4021_v38 }
 0x123   : > { %1152 = vmatpush1.msra.mxu1 %v657_v33  ;;  %1017 = vmatprep.mubr.f32.mxu1 %v5674_v7  ;;  %v640_v18 = vmul.f32 %v5701_v36, %v4021_v38  ;;  %v668_v42 = vmul.f32 %v5705_v27, %v5685_v0  ;;  %v660_v33 = vmul.f32 %v5710_v21, %v3889_v14 }
 0x124   : > { %1064 = vmatprep.subr.mxu0 %v648_v37  ;;  %1153 = vmatprep.subr.mxu1 %v650_v1  ;;  %v659_v37 = vmul.f32 %v5712_v19, %v3889_v14  ;;  %v5718_v1 = vsub.f32 1.0, %v4397_v25  ;;  %v5735_v25 = vld [vmem:[#allocation27_spill] sm:$0xff] }
 0x125   : > { %3302 = vmatmul.mubr.msk.f32.gmra.mxu0 %vm671_vm0, %v5677_v41  ;;  %3306 = vmatmul.mubr.msk.f32.gmra.mxu1 %vm671_vm0, %v5677_v41 }
 0x126   : > { %1065 = vmatpush1.msra.mxu0 %v647_v46  ;;  %1154 = vmatpush1.msra.mxu1 %v649_v61  ;;  %v5720_v46 = vsub.f32 1.0, %v4423_v31  ;;  %v4644_v31 = vld [vmem:[#allocation5] sm:$0xff] }
 0x127   : > { %1066 = vmatprep.subr.mxu0 %v640_v18  ;;  %1155 = vmatprep.subr.mxu1 %v642_v34  ;;  %v5738_v61 = vld [vmem:[#allocation34_spill] sm:$0xff] }
 0x128   : > { %1067 = vmatpush1.msra.mxu0 %v639_v30  ;;  %1156 = vmatpush1.msra.mxu1 %v641_v35  ;;  %v643_v20 = vmul.f32 %v5720_v46, %v4021_v38 }
 0x129   : > { %934 = vmatprep.mubr.f32.mxu0 %v5674_v7  ;;  %1023 = vmatprep.mubr.f32.mxu1 %v5674_v7 }
 0x12a   : > { %1238 = vmatprep.subr.mxu0 %v668_v42  ;;  %1327 = vmatprep.subr.mxu1 %v670_v48 }
 0x12b   : > { %3303 = vmatmul.mubr.msk.f32.gmra.mxu0 %vm671_vm0, %v5687_v16  ;;  %3307 = vmatmul.mubr.msk.f32.gmra.mxu1 %vm671_vm0, %v5687_v16  ;;  %v5709_v16 = vsub.f32 1.0, %v4323_v59  ;;  %v5713_v59 = vsub.f32 1.0, %v4366_v10  ;;  %v5716_v10 = vsub.f32 1.0, %v4385_v28  ;;  %v5719_v28 = vsub.f32 1.0, %v4410_v15  ;;  %v4628_v15 = vld [vmem:[#allocation5 + $0x10] sm:$0xff] }
 0x12c   : > { %940 = vmatprep.mubr.f32.mxu0 %v5674_v7  ;;  %1029 = vmatprep.mubr.f32.mxu1 %v5674_v7 }
 0x12d   : > { %1393 = vperm.xlu1 %3449, %v5667_v8   ;;  %3451 = vset.pattern.permute.xlu0 %v5707_v22  ;;  %v669_v47 = vmul.f32 %v5709_v16, %v5685_v0  ;;  %v661_v0 = vmul.f32 %v5713_v59, %v3889_v14  ;;  %v646_v11 = vmul.f32 %v5719_v28, %v4021_v38 }
 0x12f   : > { %3304 = vmatmul.mubr.msk.f32.gmra.mxu0 %vm671_vm0, %v5689_v9  ;;  %3308 = vmatmul.mubr.msk.f32.gmra.mxu1 %vm671_vm0, %v5689_v9  ;;  %v5711_v9 = vsub.f32 1.0, %v4340_v2  ;;  %v5715_v2 = vsub.f32 1.0, %v4381_v49  ;;  %v644_v49 = vmul.f32 %v5718_v1, %v4021_v38 }
 0x130   : > { %1100 = vmatprep.mubr.f32.mxu0 %v5674_v7  ;;  %1189 = vmatprep.mubr.f32.mxu1 %v5674_v7 }
 0x131   : > { %v662_v55 = vmul.f32 %v5711_v9, %v3889_v14  ;;  %v654_v26 = vmul.f32 %v5715_v2, %v5696_v29  ;;  %v651_v14 = vmul.f32 %v5716_v10, %v5696_v29 }
 0x133   : > { %3309 = vmatmul.mubr.msk.f32.vlgmr.msra.gmra.mxu0 %vm671_vm0, %v5667_v8  ;;  %3313 = vmatmul.mubr.msk.f32.vlgmr.msra.gmra.mxu1 %vm671_vm0, %v5667_v8  ;;  %v652_v8 = vmul.f32 %v5714_v40, %v5696_v29  ;;  %v645_v29 = vmul.f32 %v5721_v43, %v4021_v38  ;;  %v4636_v38 = vld [vmem:[#allocation5 + $0x18] sm:$0xff]  ;;  %v184_v43 = vld [vmem:[#allocation5 + $0x20] sm:$0x1] }
 0x134   : > { %1239 = vmatpush1.msra.mxu0 %v667_v53  ;;  %1328 = vmatpush1.msra.mxu1 %v669_v47 }
 0x135   : > { %1240 = vmatprep.subr.mxu0 %v660_v33  ;;  %1329 = vmatprep.subr.mxu1 %v662_v55 }
 0x136   : > { %1241 = vmatpush1.msra.mxu0 %v659_v37  ;;  %1330 = vmatpush1.msra.mxu1 %v661_v0 }
 0x137   : > { %1106 = vmatprep.mubr.f32.mxu0 %v5674_v7  ;;  %1195 = vmatprep.mubr.f32.mxu1 %v5674_v7 }
 0x138   : > { %1242 = vmatprep.subr.mxu0 %v652_v8  ;;  %1331 = vmatprep.subr.mxu1 %v654_v26 }
 0x139   : > { %3310 = vmatmul.mubr.msk.f32.gmra.mxu0 %vm671_vm0, %v5677_v41  ;;  %3314 = vmatmul.mubr.msk.f32.gmra.mxu1 %vm671_vm0, %v5677_v41  ;;  %v5737_v41 = vld [vmem:[#allocation33_spill] sm:$0xff] }
 0x13a   : > { %1243 = vmatpush1.msra.mxu0 %v651_v14  ;;  %1332 = vmatpush1.msra.mxu1 %v653_v63 }
 0x13b   : > { %1244 = vmatprep.subr.mxu0 %v644_v49  ;;  %1333 = vmatprep.subr.mxu1 %v646_v11 }
 0x13c   : > { %1245 = vmatpush1.msra.mxu0 %v643_v20  ;;  %1334 = vmatpush1.msra.mxu1 %v645_v29 }
 0x13d   : > { %1112 = vmatprep.mubr.f32.mxu0 %v5674_v7  ;;  %1201 = vmatprep.mubr.f32.mxu1 %v5674_v7 }
 0x13e   : > { %1432 = vmatprep.subr.mxu0 %v4212_v3  ;;  %1521 = vmatprep.subr.mxu1 %v4223_v32  ;;  %v3583_v3 = vld [vmem:[#allocation5 + $0x8] sm:$0xff] }
 0x13f   : > { %3311 = vmatmul.mubr.msk.f32.gmra.mxu0 %vm671_vm0, %v4628_v15  ;;  %3315 = vmatmul.mubr.msk.f32.gmra.mxu1 %vm671_vm0, %v4628_v15  ;;  %v5732_v32 = vld [vmem:[#allocation19_spill] sm:$0xff] }
 0x140   : > { %1118 = vmatprep.mubr.f32.mxu0 %v5674_v7  ;;  %1207 = vmatprep.mubr.f32.mxu1 %v5674_v7 }
 0x141   : > { %2781 = vperm.xlu0 %3451, %v184_v43  }
 0x143   : > { %3312 = vmatmul.mubr.msk.f32.gmra.mxu0 %vm671_vm0, %v4636_v38  ;;  %3316 = vmatmul.mubr.msk.f32.gmra.mxu1 %vm671_vm0, %v4636_v38 }
 0x144   : > { %1278 = vmatprep.mubr.f32.mxu0 %v5674_v7  ;;  %1367 = vmatprep.mubr.f32.mxu1 %v5674_v7 }
 0x147   : > { %3317 = vmatmul.mubr.msk.f32.vlgmr.msra.gmra.mxu0 %vm671_vm0, %v4644_v31  ;;  %3321 = vmatmul.mubr.msk.f32.vlgmr.msra.gmra.mxu1 %vm671_vm0, %v4644_v31 }
 0x148   : > { %1433 = vmatpush1.msra.mxu0 %v4231_v54  ;;  %1522 = vmatpush1.msra.mxu1 %v4243_v4  ;;  %v5733_v54 = vld [vmem:[#allocation31_spill] sm:$0xff]  ;;  %v5734_v4 = vld [vmem:[#allocation20_spill] sm:$0xff] }
 0x149   : > { %1434 = vmatprep.subr.mxu0 %v4158_v57  ;;  %1523 = vmatprep.subr.mxu1 %v4166_v17  ;;  %v5723_v57 = vld [vmem:[#allocation21_spill] sm:$0xff]  ;;  %v5729_v17 = vld [vmem:[#allocation28_spill] sm:$0xff] }
 0x14a   : > { %1435 = vmatpush1.msra.mxu0 %v4153_v56  ;;  %1524 = vmatpush1.msra.mxu1 %v4163_v51  ;;  %v5722_v56 = vld [vmem:[#allocation22_spill] sm:$0xff]  ;;  %v5728_v51 = vld [vmem:[#allocation15_spill] sm:$0xff] }
 0x14b   : > { %1284 = vmatprep.mubr.f32.mxu0 %v5674_v7  ;;  %1373 = vmatprep.mubr.f32.mxu1 %v5674_v7 }
 0x14c   : > { %1436 = vmatprep.subr.mxu0 %v4127_v6  ;;  %1525 = vmatprep.subr.mxu1 %v4139_v12  ;;  %v5724_v6 = vld [vmem:[#allocation24_spill] sm:$0xff]  ;;  %v5725_v12 = vld [vmem:[#allocation26_spill] sm:$0xff] }
 0x14d   : > { %3318 = vmatmul.mubr.msk.f32.gmra.mxu0 %vm671_vm0, %v3583_v3  ;;  %3322 = vmatmul.mubr.msk.f32.gmra.mxu1 %vm671_vm0, %v3583_v3 }
 0x14e   : > { %1437 = vmatpush1.msra.mxu0 %v4121_v24  ;;  %1526 = vmatpush1.msra.mxu1 %v4133_v60  ;;  %v5726_v24 = vld [vmem:[#allocation23_spill] sm:$0xff]  ;;  %v5727_v60 = vld [vmem:[#allocation25_spill] sm:$0xff] }
 0x14f   : > { %1438 = vmatprep.subr.mxu0 %v4180_v50  ;;  %1527 = vmatprep.subr.mxu1 %v4201_v13  ;;  %v5730_v50 = vld [vmem:[#allocation29_spill] sm:$0xff]  ;;  %v5731_v13 = vld [vmem:[#allocation30_spill] sm:$0xff] }
 0x150   : > { %1439 = vmatpush1.msra.mxu0 %v5722_v56  ;;  %1528 = vmatpush1.msra.mxu1 %v5723_v57 }
 0x151   : > { %1290 = vmatprep.mubr.f32.mxu0 %v5674_v7  ;;  %1379 = vmatprep.mubr.f32.mxu1 %v5674_v7 }
 0x152   : > { %1610 = vmatprep.subr.mxu0 %v5724_v6  ;;  %1699 = vmatprep.subr.mxu1 %v5725_v12 }
 0x153   : > { %3319 = vmatmul.mubr.msk.f32.gmra.mxu0 %vm671_vm0, %v4628_v15  ;;  %3323 = vmatmul.mubr.msk.f32.gmra.mxu1 %vm671_vm0, %v4628_v15 }
 0x154   : > { %1296 = vmatprep.mubr.f32.mxu0 %v5674_v7  ;;  %1385 = vmatprep.mubr.f32.mxu1 %v5674_v7 }
 0x157   : > { %3320 = vmatmul.mubr.msk.f32.gmra.mxu0 %vm671_vm0, %v4636_v38  ;;  %3324 = vmatmul.mubr.msk.f32.gmra.mxu1 %vm671_vm0, %v4636_v38 }
 0x158   : > { %1472 = vmatprep.mubr.f32.mxu0 %v5674_v7  ;;  %1561 = vmatprep.mubr.f32.mxu1 %v5674_v7 }
 0x15b   : > { %3325 = vmatmul.mubr.msk.f32.vlgmr.msra.gmra.mxu0 %vm671_vm0, %v4644_v31  ;;  %3329 = vmatmul.mubr.msk.f32.vlgmr.msra.gmra.mxu1 %vm671_vm0, %v4644_v31 }
 0x15c   : > { %1611 = vmatpush1.msra.mxu0 %v5726_v24  ;;  %1700 = vmatpush1.msra.mxu1 %v5727_v60 }
 0x15d   : > { %1612 = vmatprep.subr.mxu0 %v5728_v51  ;;  %1701 = vmatprep.subr.mxu1 %v5729_v17 }
 0x15e   : > { %1613 = vmatpush1.msra.mxu0 %v5730_v50  ;;  %1702 = vmatpush1.msra.mxu1 %v5731_v13 }
 0x15f   : > { %1478 = vmatprep.mubr.f32.mxu0 %v5674_v7  ;;  %1567 = vmatprep.mubr.f32.mxu1 %v5674_v7 }
 0x160   : > { %1614 = vmatprep.subr.mxu0 %v5732_v32  ;;  %1703 = vmatprep.subr.mxu1 %v5733_v54 }
 0x161   : > { %3326 = vmatmul.mubr.msk.f32.gmra.mxu0 %vm671_vm0, %v3583_v3  ;;  %3330 = vmatmul.mubr.msk.f32.gmra.mxu1 %vm671_vm0, %v3583_v3 }
 0x162   : > { %1615 = vmatpush1.msra.mxu0 %v5734_v4  ;;  %1704 = vmatpush1.msra.mxu1 %v5735_v25 }
 0x163   : > { %1616 = vmatprep.subr.mxu0 %v5736_v45  ;;  %1705 = vmatprep.subr.mxu1 %v5737_v41 }
 0x164   : > { %1617 = vmatpush1.msra.mxu0 %v4342_v44  ;;  %1706 = vmatpush1.msra.mxu1 %v5738_v61 }
 0x165   : > { %1484 = vmatprep.mubr.f32.mxu0 %v5674_v7  ;;  %1573 = vmatprep.mubr.f32.mxu1 %v5674_v7 }
 0x166   : > { %3327 = vmatmul.mubr.msk.f32.gmra.mxu0 %vm671_vm0, %v4628_v15  ;;  %3331 = vmatmul.mubr.msk.f32.gmra.mxu1 %vm671_vm0, %v4628_v15 }
 0x167   : > { %1490 = vmatprep.mubr.f32.mxu0 %v5674_v7  ;;  %1579 = vmatprep.mubr.f32.mxu1 %v5674_v7 }
 0x16a   : > { %3328 = vmatmul.mubr.msk.f32.gmra.mxu0 %vm671_vm0, %v4636_v38  ;;  %3332 = vmatmul.mubr.msk.f32.gmra.mxu1 %vm671_vm0, %v4636_v38 }
 0x16b   : > { %1650 = vmatprep.mubr.f32.mxu0 %v5674_v7  ;;  %1739 = vmatprep.mubr.f32.mxu1 %v5674_v7 }
 0x16e   : > { %3333 = vmatmul.mubr.msk.f32.vlgmr.msra.gmra.mxu0 %vm671_vm0, %v4644_v31  ;;  %3337 = vmatmul.mubr.msk.f32.vlgmr.msra.gmra.mxu1 %vm671_vm0, %v4644_v31 }
 0x16f   : > { %1656 = vmatprep.mubr.f32.mxu0 %v5674_v7  ;;  %1745 = vmatprep.mubr.f32.mxu1 %v5674_v7 }
 0x172   : > { %3334 = vmatmul.mubr.msk.f32.gmra.mxu0 %vm671_vm0, %v3583_v3  ;;  %3338 = vmatmul.mubr.msk.f32.gmra.mxu1 %vm671_vm0, %v3583_v3 }
 0x173   : > { %1662 = vmatprep.mubr.f32.mxu0 %v5674_v7  ;;  %1751 = vmatprep.mubr.f32.mxu1 %v5674_v7 }
 0x176   : > { %3335 = vmatmul.mubr.msk.f32.gmra.mxu0 %vm671_vm0, %v4628_v15  ;;  %3339 = vmatmul.mubr.msk.f32.gmra.mxu1 %vm671_vm0, %v4628_v15 }
 0x177   : > { %1668 = vmatprep.mubr.f32.mxu0 %v5674_v7  ;;  %1757 = vmatprep.mubr.f32.mxu1 %v5674_v7 }
 0x17a   : > { %3336 = vmatmul.mubr.msk.f32.gmra.mxu0 %vm671_vm0, %v4636_v38  ;;  %3340 = vmatmul.mubr.msk.f32.gmra.mxu1 %vm671_vm0, %v4636_v38 }
 0x17b   : > { %1991 = vmatprep.mubr.f32.mxu0 %v5674_v7  ;;  %2062 = vmatprep.mubr.f32.mxu1 %v5674_v7 }
 0x196   : > { %v4858_v25 = vpop.permute.xlu1 %1405 }
 0x1c9   : > { %v4742_v44 = vpop.f32.mrf.mxu0 }
 0x1cb   : > { %v4744_v36 = vpop.f32.mrf.mxu1  ;;  %v4746_v18 = vpop.f32.mrf.mxu0 }
 0x1cd   : > { %v4748_v62 = vpop.f32.mrf.mxu1 }
 0x1cf   : > { %v4750_v34 = vpop.f32.mrf.mxu0 }
 0x1d0   : > { %v4752_v5 = vpop.f32.mrf.mxu1 }
 0x1d1   : > { %v4754_v30 = vpop.f32.mrf.mxu0 }
 0x1d2   : > { %v4756_v39 = vpop.f32.mrf.mxu1 }
 0x1d6   : > { %v4758_v35 = vpop.f32.mrf.mxu0 }
 0x1d8   : > { %v4760_v27 = vpop.f32.mrf.mxu1  ;;  %v4762_v42 = vpop.f32.mrf.mxu0 }
 0x1da   : > { %v4764_v58 = vpop.f32.mrf.mxu1  ;;  %v4766_v48 = vpop.f32.mrf.mxu0 }
 0x1dc   : > { %v4768_v22 = vpop.f32.mrf.mxu1  ;;  %v4770_v23 = vpop.f32.mrf.mxu0 }
 0x1de   : > { %v4772_v53 = vpop.f32.mrf.mxu1  ;;  %v4774_v16 = vpop.f32.mrf.mxu0 }
 0x1df   : > { %5739 = vst [vmem:[#allocation14_spill] sm:$0xff] %v4774_v16 }
 0x1e0   : > { %v4776_v47 = vpop.f32.mrf.mxu1  ;;  %v4778_v21 = vpop.f32.mrf.mxu0 }
 0x1e1   : > { %5740 = vst [vmem:[#allocation13_spill] sm:$0xff] %v4776_v47  ;;  %5741 = vst [vmem:[#allocation17_spill] sm:$0xff] %v4778_v21 }
 0x1e2   : > { %v4780_v33 = vpop.f32.mrf.mxu1 }
 0x1e3   : > { %5742 = vst [vmem:[#allocation12_spill] sm:$0xff] %v4780_v33 }
 0x1e5   : > { %v4782_v9 = vpop.f32.mrf.mxu0  ;;  %v4784_v55 = vpop.f32.mrf.mxu1 }
 0x1e6   : > { %5743 = vst [vmem:[#allocation11_spill] sm:$0xff] %v4782_v9  ;;  %5744 = vst [vmem:[#allocation18_spill] sm:$0xff] %v4784_v55 }
 0x1e7   : > { %v4786_v19 = vpop.f32.mrf.mxu0  ;;  %v4788_v37 = vpop.f32.mrf.mxu1 }
 0x1e8   : > { %5745 = vst [vmem:[#allocation22_spill] sm:$0xff] %v4786_v19  ;;  %5746 = vst [vmem:[#allocation21_spill] sm:$0xff] %v4788_v37 }
 0x1eb   : > { %v4790_v59 = vpop.f32.mrf.mxu0  ;;  %v4792_v0 = vpop.f32.mrf.mxu1 }
 0x1ec   : > { %5747 = vst [vmem:[#allocation24_spill] sm:$0xff] %v4790_v59  ;;  %5748 = vst [vmem:[#allocation26_spill] sm:$0xff] %v4792_v0 }
 0x1ed   : > { %v4794_v40 = vpop.f32.mrf.mxu0  ;;  %v4796_v8 = vpop.f32.mrf.mxu1 }
 0x1ef   : > { %v4798_v2 = vpop.f32.mrf.mxu0  ;;  %v4800_v26 = vpop.f32.mrf.mxu1 }
 0x1f1   : > { %v4802_v10 = vpop.f32.mrf.mxu0  ;;  %v4804_v14 = vpop.f32.mrf.mxu1 }
 0x1f3   : > { %v4806_v52 = vpop.f32.mrf.mxu0  ;;  %v4808_v63 = vpop.f32.mrf.mxu1 }
 0x1f4   : > { %5749 = vst [vmem:[#allocation23_spill] sm:$0xff] %v4806_v52  ;;  %5750 = vst [vmem:[#allocation25_spill] sm:$0xff] %v4808_v63  ;;  %v4878_v63 = vpop.permute.xlu0 %1401 }
 0x1f5   : > { %v4810_v1 = vpop.f32.mrf.mxu0  ;;  %v4812_v49 = vpop.f32.mrf.mxu1 }
 0x1f6   : > { %5751 = vst [vmem:[#allocation15_spill] sm:$0xff] %v4810_v1  ;;  %5752 = vst [vmem:[#allocation28_spill] sm:$0xff] %v4812_v49 }
 0x1f9   : > { %v4814_v28 = vpop.f32.mrf.mxu0  ;;  %v4816_v11 = vpop.f32.mrf.mxu1 }
 0x1fa   : > { %5753 = vst [vmem:[#allocation29_spill] sm:$0xff] %v4814_v28  ;;  %5754 = vst [vmem:[#allocation30_spill] sm:$0xff] %v4816_v11 }
 0x1fb   : > { %v4818_v46 = vpop.f32.mrf.mxu0  ;;  %v4820_v20 = vpop.f32.mrf.mxu1 }
 0x1fc   : > { %5755 = vst [vmem:[#allocation19_spill] sm:$0xff] %v4818_v46  ;;  %5756 = vst [vmem:[#allocation31_spill] sm:$0xff] %v4820_v20 }
 0x1ff   : > { %v4822_v29 = vpop.f32.mrf.mxu0  ;;  %v4824_v15 = vpop.f32.mrf.mxu1 }
 0x200   : > { %5757 = vst [vmem:[#allocation20_spill] sm:$0xff] %v4822_v29  ;;  %5758 = vst [vmem:[#allocation27_spill] sm:$0xff] %v4824_v15 }
 0x201   : > { %v4826_v38 = vpop.f32.mrf.mxu0  ;;  %v4828_v31 = vpop.f32.mrf.mxu1 }
 0x202   : > { %5759 = vst [vmem:[#allocation32_spill] sm:$0xff] %v4826_v38  ;;  %5760 = vst [vmem:[#allocation33_spill] sm:$0xff] %v4828_v31 }
 0x203   : > { %v4830_v3 = vpop.f32.mrf.mxu0  ;;  %v4832_v56 = vpop.f32.mrf.mxu1 }
 0x204   : > { %5761 = vst [vmem:[#allocation34_spill] sm:$0xff] %v4830_v3  ;;  %5762 = vst [vmem:[#allocation35_spill] sm:$0xff] %v4832_v56 }
 0x205   : > { %v4834_v57 = vpop.f32.mrf.mxu0  ;;  %v4836_v6 = vpop.f32.mrf.mxu1 }
 0x206   : > { %5763 = vst [vmem:[#allocation36_spill] sm:$0xff] %v4834_v57  ;;  %5764 = vst [vmem:[#allocation37_spill] sm:$0xff] %v4836_v6 }
 0x207   : > { %v4838_v12 = vpop.f32.mrf.mxu0  ;;  %v4840_v24 = vpop.f32.mrf.mxu1 }
 0x208   : > { %5765 = vst [vmem:[#allocation38_spill] sm:$0xff] %v4838_v12  ;;  %5766 = vst [vmem:[#allocation39_spill] sm:$0xff] %v4840_v24 }
 0x209   : > { %v4842_v60 = vpop.f32.mrf.mxu0  ;;  %v4844_v51 = vpop.f32.mrf.mxu1 }
 0x20a   : > { %5767 = vst [vmem:[#allocation40_spill] sm:$0xff] %v4842_v60  ;;  %5768 = vst [vmem:[#allocation41_spill] sm:$0xff] %v4844_v51  ;;  %v4872_v51 = vpop.permute.xlu1 %1397 }
 0x20d   : > { %v4846_v17 = vpop.f32.mrf.mxu0  ;;  %v4848_v50 = vpop.f32.mrf.mxu1 }
 0x20e   : > { %5769 = vst [vmem:[#allocation42_spill] sm:$0xff] %v4846_v17  ;;  %5770 = vst [vmem:[#allocation43_spill] sm:$0xff] %v4848_v50 }
 0x20f   : > { %v4850_v13 = vpop.f32.mrf.mxu0  ;;  %v4852_v32 = vpop.f32.mrf.mxu1 }
 0x210   : > { %5771 = vst [vmem:[#allocation44_spill] sm:$0xff] %v4850_v13  ;;  %5772 = vst [vmem:[#allocation45_spill] sm:$0xff] %v4852_v32  ;;  %v4874_v13 = vpop.permute.xlu1 %1393 }
 0x213   : > { %v4854_v54 = vpop.f32.mrf.mxu0  ;;  %v4856_v4 = vpop.f32.mrf.mxu1 }
 0x214   : > { %5773 = vst [vmem:[#allocation46_spill] sm:$0xff] %v4854_v54  ;;  %5774 = vst [vmem:[#allocation47_spill] sm:$0xff] %v4856_v4 }
 0x215   : > { %v4860_v45 = vpop.f32.mrf.mxu0  ;;  %v4862_v41 = vpop.f32.mrf.mxu1 }
 0x216   : > { %5775 = vst [vmem:[#allocation48_spill] sm:$0xff] %v4860_v45  ;;  %5776 = vst [vmem:[#allocation49_spill] sm:$0xff] %v4862_v41 }
 0x217   : > { %v4864_v61 = vpop.f32.mrf.mxu0  ;;  %v4866_v43 = vpop.f32.mrf.mxu1 }
 0x218   : > { %5777 = vst [vmem:[#allocation50_spill] sm:$0xff] %v4864_v61  ;;  %5778 = vst [vmem:[#allocation51_spill] sm:$0xff] %v4866_v43 }
 0x219   : > { %v4868_v24 = vpop.f32.mrf.mxu0  ;;  %v4870_v12 = vpop.f32.mrf.mxu1 }
 0x21a   : > { %5779 = vst [vmem:[#allocation52_spill] sm:$0xff] %v4868_v24  ;;  %5780 = vst [vmem:[#allocation53_spill] sm:$0xff] %v4870_v12 }
 0x21b   : > { %v1474_v60 = vpop.f32.mrf.mxu0  ;;  %v1563_v50 = vpop.f32.mrf.mxu1 }
 0x21c   : > { %v1475_v41 = vadd.f32 %v1474_v60, %v4874_v13 }
 0x21d   : > { %v1476_v17 = vpop.f32.mrf.mxu0  ;;  %v1565_v32 = vpop.f32.mrf.mxu1 }
 0x21e   : > { %v1477_v43 = vadd.f32 %v1476_v17, %v4874_v13  ;;  %3516 = vtanh.f32 %v1475_v41 }
 0x220   : > { %3518 = vtanh.f32 %v1477_v43 }
 0x221   : > { %v1480_v4 = vpop.f32.mrf.mxu0  ;;  %v1569_v54 = vpop.f32.mrf.mxu1 }
 0x222   : > { %v1481_v12 = vadd.f32 %v1480_v4, %v4872_v51 }
 0x223   : > { %v1482_v45 = vpop.f32.mrf.mxu0  ;;  %v1571_v61 = vpop.f32.mrf.mxu1 }
 0x224   : > { %v1483_v52 = vadd.f32 %v1482_v45, %v4872_v51  ;;  %3520 = vtanh.f32 %v1481_v12 }
 0x226   : > { %v1486_v24 = vpop.f32.mrf.mxu0  ;;  %v1575_v49 = vpop.f32.mrf.mxu1  ;;  %3522 = vtanh.f32 %v1483_v52 }
 0x227   : > { %v1487_v1 = vadd.f32 %v1486_v24, %v4878_v63  ;;  %v1576_v12 = vadd.f32 %v1575_v49, %v4878_v63 }
 0x228   : > { %v1488_v11 = vpop.f32.mrf.mxu0  ;;  %v1577_v20 = vpop.f32.mrf.mxu1 }
 0x229   : > { %v1489_v28 = vadd.f32 %v1488_v11, %v4878_v63  ;;  %3524 = vtanh.f32 %v1487_v1  ;;  %v1578_v24 = vadd.f32 %v1577_v20, %v4878_v63  ;;  %v1572_v1 = vadd.f32 %v1571_v61, %v4872_v51 }
 0x22a   : > { %v1492_v60 = vpop.f32.mrf.mxu0  ;;  %v1581_v46 = vpop.f32.mrf.mxu1  ;;  %v1566_v20 = vadd.f32 %v1565_v32, %v4874_v13 }
 0x22b   : > { %v1493_v17 = vadd.f32 %v1492_v60, %v4858_v25  ;;  %3526 = vtanh.f32 %v1489_v28  ;;  %v1582_v45 = vadd.f32 %v1581_v46, %v4858_v25  ;;  %v1570_v46 = vadd.f32 %v1569_v54, %v4872_v51  ;;  %v4899_v61 = vpop.eup %3516 }
 0x22c   : > { %v1494_v4 = vpop.f32.mrf.mxu0  ;;  %v1583_v15 = vpop.f32.mrf.mxu1 }
 0x22d   : > { %v1495_v41 = vadd.f32 %v1494_v4, %v4858_v25  ;;  %3528 = vtanh.f32 %v1493_v17  ;;  %v1584_v11 = vadd.f32 %v1583_v15, %v4858_v25  ;;  %v1564_v15 = vadd.f32 %v1563_v50, %v4874_v13 }
 0x22e   : > { %v1652_v43 = vpop.f32.mrf.mxu0  ;;  %v4890_v52 = vpop.f32.mrf.mxu1 }
 0x22f   : > { %3530 = vtanh.f32 %v1495_v41  ;;  %v1653_v4 = vadd.f32 %v1652_v43, %v4874_v13 }
 0x230   : > { %3532 = vtanh.f32 %v1584_v11  ;;  %v1654_v28 = vpop.f32.mrf.mxu0  ;;  %v4894_v60 = vpop.f32.mrf.mxu1 }
 0x231   : > { %3534 = vtanh.f32 %v1582_v45  ;;  %v1655_v54 = vadd.f32 %v1654_v28, %v4874_v13  ;;  %v4902_v11 = vpop.eup %3518 }
 0x232   : > { %3536 = vtanh.f32 %v1578_v24  ;;  %v1658_v17 = vpop.f32.mrf.mxu0  ;;  %v1747_v49 = vpop.f32.mrf.mxu1 }
 0x233   : > { %3538 = vtanh.f32 %v1576_v12  ;;  %v1659_v32 = vadd.f32 %v1658_v17, %v4872_v51  ;;  %v4905_v29 = vpop.eup %3520 }
 0x234   : > { %3540 = vtanh.f32 %v1572_v1  ;;  %v1660_v41 = vpop.f32.mrf.mxu0  ;;  %v1749_v45 = vpop.f32.mrf.mxu1  ;;  %v5001_v57 = vmul.f32 %v4905_v29, %v4905_v29 }
 0x235   : > { %3542 = vtanh.f32 %v1570_v46  ;;  %v1661_v50 = vadd.f32 %v1660_v41, %v4872_v51  ;;  %v4908_v43 = vpop.eup %3522 }
 0x236   : > { %3544 = vtanh.f32 %v1566_v20  ;;  %v1664_v24 = vpop.f32.mrf.mxu0  ;;  %v1753_v12 = vpop.f32.mrf.mxu1 }
 0x237   : > { %3546 = vtanh.f32 %v1564_v15  ;;  %v1665_v1 = vadd.f32 %v1664_v24, %v4878_v63  ;;  %v4911_v28 = vpop.eup %3524 }
 0x238   : > { %3548 = vtanh.f32 %v1653_v4  ;;  %v1666_v46 = vpop.f32.mrf.mxu0  ;;  %v1755_v31 = vpop.f32.mrf.mxu1 }
 0x239   : > { %3550 = vtanh.f32 %v1655_v54  ;;  %v1667_v20 = vadd.f32 %v1666_v46, %v4878_v63  ;;  %v4914_v17 = vpop.eup %3526 }
 0x23a   : > { %3552 = vtanh.f32 %v1659_v32  ;;  %v1670_v38 = vpop.f32.mrf.mxu0  ;;  %v4916_v15 = vpop.eup %3528 }
 0x23b   : > { %3554 = vtanh.f32 %v1661_v50  ;;  %v1671_v41 = vadd.f32 %v1670_v38, %v4858_v25  ;;  %v1759_v56 = vpop.f32.mrf.mxu1  ;;  %v1756_v50 = vadd.f32 %v1755_v31, %v4878_v63 }
 0x23c   : > { %v4919_v4 = vpop.eup %3530  ;;  %3556 = vtanh.f32 %v1665_v1  ;;  %v1672_v24 = vpop.f32.mrf.mxu0  ;;  %v1760_v54 = vadd.f32 %v1759_v56, %v4858_v25 }
 0x23d   : > { %v4921_v3 = vpop.eup %3532  ;;  %3558 = vtanh.f32 %v1667_v20  ;;  %v1673_v46 = vadd.f32 %v1672_v24, %v4858_v25  ;;  %v1761_v6 = vpop.f32.mrf.mxu1  ;;  %1951 = vmatprep.subr.mxu0 %v4919_v4  ;;  %v1754_v20 = vadd.f32 %v1753_v12, %v4878_v63  ;;  %v1750_v24 = vadd.f32 %v1749_v45, %v4872_v51  ;;  %v4950_v45 = vld [vmem:[#allocation5 + $0x20] sm:$0xff] }
 0x23e   : > { %v4926_v32 = vpop.eup %3534  ;;  %3560 = vtanh.f32 %v1671_v41  ;;  %v1762_v38 = vadd.f32 %v1761_v6, %v4858_v25  ;;  %2022 = vmatprep.subr.mxu1 %v4921_v3  ;;  %1952 = vmatpush1.msra.mxu0 %v4916_v15  ;;  %v1748_v6 = vadd.f32 %v1747_v49, %v4872_v51  ;;  %v1744_v25 = vadd.f32 %v4894_v60, %v4874_v13 }
 0x23f   : > { %v3537_v1 = vpop.eup %3536  ;;  %3562 = vtanh.f32 %v1673_v46  ;;  %2023 = vmatpush1.msra.mxu1 %v4926_v32  ;;  %1953 = vmatprep.subr.mxu0 %v4914_v17  ;;  %v1742_v51 = vadd.f32 %v4890_v52, %v4874_v13 }
 0x240   : > { %v4935_v56 = vpop.eup %3538  ;;  %3564 = vtanh.f32 %v1762_v38  ;;  %2024 = vmatprep.subr.mxu1 %v3537_v1  ;;  %1954 = vmatpush1.msra.mxu0 %v4911_v28 }
 0x241   : > { %v4939_v31 = vpop.eup %3540  ;;  %3566 = vtanh.f32 %v1760_v54  ;;  %2025 = vmatpush1.msra.mxu1 %v4935_v56  ;;  %1955 = vmatprep.subr.mxu0 %v4908_v43  ;;  %v5047_v21 = vmul.f32 %v4935_v56, %v4935_v56 }
 0x242   : > { %v4944_v63 = vpop.eup %3542  ;;  %3568 = vtanh.f32 %v1756_v50  ;;  %2026 = vmatprep.subr.mxu1 %v4939_v31  ;;  %1956 = vmatpush1.msra.mxu0 %v4905_v29  ;;  %v4977_v50 = vmul.f32 %v4899_v61, %v4899_v61  ;;  %v5024_v29 = vmul.f32 %v4926_v32, %v4926_v32  ;;  %v5060_v56 = vmul.f32 %v4939_v31, %v4939_v31 }
 0x243   : > { %v3545_v12 = vpop.eup %3544  ;;  %3570 = vtanh.f32 %v1754_v20  ;;  %2027 = vmatpush1.msra.mxu1 %v4944_v63  ;;  %1957 = vmatprep.subr.mxu0 %v4902_v11  ;;  %v4983_v20 = vmul.f32 %v4902_v11, %v4902_v11  ;;  %v5070_v32 = vmul.f32 %v4944_v63, %v4944_v63 }
 0x244   : > { %v3547_v49 = vpop.eup %3546  ;;  %3572 = vtanh.f32 %v1750_v24  ;;  %2028 = vmatprep.subr.mxu1 %v3545_v12  ;;  %1958 = vmatpush1.msra.mxu0 %v4899_v61  ;;  %5781 = vst [vmem:[#allocation54_spill] sm:$0xff] %v4977_v50  ;;  %v4985_v24 = vmul.f32 %v3545_v12, %v3545_v12  ;;  %v4997_v61 = vmul.f32 %v4908_v43, %v4908_v43  ;;  %v5782_v47 = vsub.f32 1.0, %v4977_v50 }
 0x245   : > { %v4957_v60 = vpop.eup %3548  ;;  %3574 = vtanh.f32 %v1748_v6  ;;  %2029 = vmatpush1.msra.mxu1 %v3547_v49  ;;  %3341 = vmatmul.mubr.msk.f32.vlgmr.msra.gmra.mxu0 %vm671_vm0, %v4950_v45  ;;  %v4987_v6 = vmul.f32 %v3547_v49, %v3547_v49  ;;  %v5008_v12 = vmul.f32 %v4921_v3, %v4921_v3  ;;  %v5016_v43 = vmul.f32 %v4914_v17, %v4914_v17 }
 0x246   : > { %v4961_v41 = vpop.eup %3550  ;;  %3576 = vtanh.f32 %v1744_v25  ;;  %3342 = vmatmul.mubr.msk.f32.vlgmr.msra.gmra.mxu1 %vm671_vm0, %v4950_v45  ;;  %2133 = vmatprep.mubr.f32.mxu0 %v5674_v7  ;;  %v5026_v3 = vmul.f32 %v3537_v1, %v3537_v1  ;;  %v5035_v17 = vmul.f32 %v4911_v28, %v4911_v28  ;;  %v1860_v33 = vmul.f32 %v5782_v47, %v4742_v44 }
 0x247   : > { %v4966_v13 = vpop.eup %3552  ;;  %3578 = vtanh.f32 %v1742_v51  ;;  %2204 = vmatprep.mubr.f32.mxu1 %v5674_v7  ;;  %v4993_v51 = vmul.f32 %v4919_v4, %v4919_v4  ;;  %v5012_v4 = vmul.f32 %v4916_v15, %v4916_v15  ;;  %v5783_v16 = vsub.f32 1.0, %v4983_v20 }
 0x248   : > { %v4969_v52 = vpop.eup %3554  ;;  %v5784_v28 = vsub.f32 1.0, %v4985_v24  ;;  %v5785_v0 = vsub.f32 1.0, %v4987_v6  ;;  %v5791_v59 = vsub.f32 1.0, %v5016_v43 }
 0x249   : > { %v4971_v54 = vpop.eup %3556  ;;  %v1861_v19 = vmul.f32 %v5783_v16, %v4746_v18  ;;  %v5786_v47 = vsub.f32 1.0, %v4993_v51  ;;  %v5787_v18 = vsub.f32 1.0, %v4997_v61 }
 0x24a   : > { %v4973_v46 = vpop.eup %3558  ;;  %v1863_v63 = vmul.f32 %v5784_v28, %v4748_v62  ;;  %v1862_v50 = vmul.f32 %v5785_v0, %v4744_v36  ;;  %v5788_v62 = vsub.f32 1.0, %v5001_v57  ;;  %v5789_v36 = vsub.f32 1.0, %v5008_v12 }
 0x24b   : > { %v4979_v38 = vpop.eup %3560  ;;  %v1885_v37 = vmul.f32 %v5786_v47, %v4770_v23  ;;  %v1869_v16 = vmul.f32 %v5787_v18, %v4754_v30  ;;  %v5790_v23 = vsub.f32 1.0, %v5012_v4  ;;  %v1877_v30 = vmul.f32 %v5791_v59, %v4762_v42 }
 0x24c   : > { %v4989_v25 = vpop.eup %3562  ;;  %v1868_v28 = vmul.f32 %v5788_v62, %v4750_v34  ;;  %v1887_v0 = vmul.f32 %v5789_v36, %v4772_v53  ;;  %v1839_v18 = vsub.f32 1.0, %v5060_v56  ;;  %v5792_v34 = vsub.f32 1.0, %v5024_v29 }
 0x24d   : > { %v5003_v11 = vpop.eup %3564  ;;  %2093 = vmatprep.subr.mxu0 %v4989_v25  ;;  %v1884_v47 = vmul.f32 %v5790_v23, %v4766_v48  ;;  %v5793_v53 = vsub.f32 1.0, %v5026_v3  ;;  %v1838_v48 = vsub.f32 1.0, %v5070_v32  ;;  %v5121_v23 = vmul.f32 %v4989_v25, %v4989_v25 }
 0x24e   : > { %v5018_v49 = vpop.eup %3566  ;;  %2164 = vmatprep.subr.mxu1 %v5003_v11  ;;  %2094 = vmatpush1.msra.mxu0 %v4979_v38  ;;  %v1886_v62 = vmul.f32 %v5792_v34, %v4768_v22  ;;  %v5794_v42 = vsub.f32 1.0, %v5035_v17  ;;  %v5128_v59 = vmul.f32 %v5003_v11, %v5003_v11  ;;  %v5132_v22 = vmul.f32 %v4979_v38, %v4979_v38 }
 0x24f   : > { %v5029_v15 = vpop.eup %3568  ;;  %2165 = vmatpush1.msra.mxu1 %v5018_v49  ;;  %2095 = vmatprep.subr.mxu0 %v4973_v46  ;;  %v1879_v36 = vmul.f32 %v5793_v53, %v4764_v58  ;;  %v5795_v58 = vsub.f32 1.0, %v5047_v21  ;;  %v1871_v38 = vmul.f32 %v1839_v18, %v4756_v39  ;;  %v5166_v39 = vmul.f32 %v4969_v52, %v4969_v52 }
 0x250   : > { %v5040_v1 = vpop.eup %3570  ;;  %2166 = vmatprep.subr.mxu1 %v5029_v15  ;;  %2096 = vmatpush1.msra.mxu0 %v4971_v54  ;;  %v5150_v11 = vmul.f32 %v5029_v15, %v5029_v15  ;;  %v1856_v15 = vsub.f32 1.0, %v5132_v22  ;;  %v5831_v56 = vsub.f32 1.0, %v4985_v24  ;;  %v5836_v32 = vsub.f32 1.0, %v4987_v6  ;;  %v5839_v6 = vld [vmem:[#allocation50_spill] sm:$0xff] }
 0x251   : > { %v5051_v55 = vpop.eup %3572  ;;  %2167 = vmatpush1.msra.mxu1 %v5040_v1  ;;  %2097 = vmatprep.subr.mxu0 %v4969_v52  ;;  %v1878_v25 = vmul.f32 %v5795_v58, %v4760_v27  ;;  %v5154_v27 = vmul.f32 %v4971_v54, %v4971_v54  ;;  %v1859_v54 = vsub.f32 1.0, %v5128_v59  ;;  %v5842_v59 = vld [vmem:[#allocation49_spill] sm:$0xff]  ;;  %v5843_v22 = vld [vmem:[#allocation46_spill] sm:$0xff] }
 0x252   : > { %v5062_v9 = vpop.eup %3574  ;;  %2168 = vmatprep.subr.mxu1 %v5051_v55  ;;  %2098 = vmatpush1.msra.mxu0 %v4966_v13 }
 0x253   : > { %v3577_v31 = vpop.eup %3576  ;;  %2169 = vmatpush1.msra.mxu1 %v5062_v9  ;;  %2099 = vmatprep.subr.mxu0 %v4961_v41 }
 0x254   : > { %v3579_v44 = vpop.eup %3578  ;;  %2170 = vmatprep.subr.mxu1 %v3577_v31  ;;  %2100 = vmatpush1.msra.mxu0 %v4957_v60  ;;  %v5190_v34 = vmul.f32 %v3577_v31, %v3577_v31 }
 0x255   : > { %2171 = vmatpush1.msra.mxu1 %v3579_v44  ;;  %3343 = vmatmul.mubr.msk.f32.vlgmr.msra.gmra.mxu0 %vm671_vm0, %v4950_v45 }
 0x256   : > { %3344 = vmatmul.mubr.msk.f32.vlgmr.msra.gmra.mxu1 %vm671_vm0, %v4950_v45  ;;  %2235 = vmatprep.subr.mxu0 %v1885_v37  ;;  %v1876_v37 = vmul.f32 %v5794_v42, %v4758_v35  ;;  %v5143_v35 = vmul.f32 %v4973_v46, %v4973_v46  ;;  %v1870_v46 = vmul.f32 %v1838_v48, %v4752_v5 }
 0x257   : > { %2306 = vmatprep.subr.mxu1 %v1887_v0  ;;  %2236 = vmatpush1.msra.mxu0 %v1884_v47  ;;  %v5139_v0 = vmul.f32 %v5018_v49, %v5018_v49  ;;  %v1857_v49 = vsub.f32 1.0, %v5121_v23  ;;  %v5162_v47 = vmul.f32 %v5040_v1, %v5040_v1  ;;  %v5176_v5 = vmul.f32 %v4966_v13, %v4966_v13 }
 0x258   : > { %2307 = vmatpush1.msra.mxu1 %v1886_v62  ;;  %2237 = vmatprep.subr.mxu0 %v1877_v30  ;;  %v1849_v52 = vsub.f32 1.0, %v5143_v35  ;;  %v5186_v30 = vmul.f32 %v4961_v41, %v4961_v41  ;;  %v1848_v13 = vsub.f32 1.0, %v5154_v27 }
 0x259   : > { %2308 = vmatprep.subr.mxu1 %v1879_v36  ;;  %2238 = vmatpush1.msra.mxu0 %v1876_v37  ;;  %v1858_v1 = vsub.f32 1.0, %v5139_v0  ;;  %v1850_v41 = vsub.f32 1.0, %v5162_v47  ;;  %v1840_v31 = vsub.f32 1.0, %v5176_v5  ;;  %v5796_v36 = vld [vmem:[#allocation24_spill] sm:$0xff] }
 0x25a   : > { %2309 = vmatpush1.msra.mxu1 %v1878_v25  ;;  %2239 = vmatprep.subr.mxu0 %v1869_v16  ;;  %v5172_v16 = vmul.f32 %v5051_v55, %v5051_v55  ;;  %v1851_v55 = vsub.f32 1.0, %v5150_v11  ;;  %v1880_v42 = vmul.f32 %v1848_v13, %v5796_v36  ;;  %v5798_v25 = vld [vmem:[#allocation22_spill] sm:$0xff]  ;;  %v5802_v36 = vld [vmem:[#allocation17_spill] sm:$0xff] }
 0x25b   : > { %2310 = vmatprep.subr.mxu1 %v1871_v38  ;;  %2240 = vmatpush1.msra.mxu0 %v1868_v28  ;;  %v5182_v28 = vmul.f32 %v5062_v9, %v5062_v9  ;;  %v1889_v9 = vmul.f32 %v1857_v49, %v4802_v10 }
 0x25c   : > { %2311 = vmatpush1.msra.mxu1 %v1870_v46  ;;  %2241 = vmatprep.subr.mxu0 %v1861_v19  ;;  %v5194_v19 = vmul.f32 %v4957_v60, %v4957_v60  ;;  %v1891_v60 = vmul.f32 %v1859_v54, %v4804_v14  ;;  %v1843_v10 = vsub.f32 1.0, %v5172_v16  ;;  %v1881_v14 = vmul.f32 %v1849_v52, %v4794_v40  ;;  %v5797_v40 = vld [vmem:[#allocation26_spill] sm:$0xff]  ;;  %v5799_v46 = vld [vmem:[#allocation21_spill] sm:$0xff] }
 0x25d   : > { %2312 = vmatprep.subr.mxu1 %v1863_v63  ;;  %2242 = vmatpush1.msra.mxu0 %v1860_v33  ;;  %v1841_v33 = vsub.f32 1.0, %v5166_v39  ;;  %v5202_v63 = vmul.f32 %v3579_v44, %v3579_v44  ;;  %v1890_v44 = vmul.f32 %v1858_v1, %v4800_v26  ;;  %v1842_v62 = vsub.f32 1.0, %v5182_v28 }
 0x25e   : > { %2275 = vmatprep.mubr.f32.mxu0 %v5674_v7  ;;  %2313 = vmatpush1.msra.mxu1 %v1862_v50  ;;  %v1888_v50 = vmul.f32 %v1856_v15, %v4798_v2  ;;  %v1833_v2 = vsub.f32 1.0, %v5186_v30  ;;  %v1883_v53 = vmul.f32 %v1851_v55, %v4796_v8  ;;  %v1835_v26 = vsub.f32 1.0, %v5190_v34 }
 0x25f   : > { %2346 = vmatprep.mubr.f32.mxu1 %v5674_v7  ;;  %3345 = vmatmul.mubr.msk.f32.vlgmr.msra.gmra.mxu0 %vm671_vm0, %v4950_v45  ;;  %v1832_v37 = vsub.f32 1.0, %v5194_v19  ;;  %v1882_v58 = vmul.f32 %v1850_v41, %v5797_v40  ;;  %v1873_v38 = vmul.f32 %v1841_v33, %v5798_v25  ;;  %v1834_v8 = vsub.f32 1.0, %v5202_v63  ;;  %v5804_v25 = vld [vmem:[#allocation14_spill] sm:$0xff]  ;;  %v2782_v63 = vpop.permute.xlu0 %2781 }
 0x260   : > { %3346 = vmatmul.mubr.msk.f32.vlgmr.msra.gmra.mxu1 %vm671_vm0, %v4950_v45  ;;  %2377 = vmatprep.subr.mxu0 %v1889_v9  ;;  %v1875_v9 = vmul.f32 %v1843_v10, %v5799_v46  ;;  %v1865_v40 = vmul.f32 %v1833_v2, %v5802_v36  ;;  %v3717_v30 = vmov 1.0  }
 0x261   : > { %2448 = vmatprep.subr.mxu1 %v1891_v60  ;;  %2378 = vmatpush1.msra.mxu0 %v1888_v50  ;;  %v5800_v60 = vld [vmem:[#allocation11_spill] sm:$0xff]  ;;  %v1864_v46 = vmul.f32 %v1832_v37, %v5804_v25  ;;  %3355 = vst [vmem:[%s5376_s17 + $0x2] ss:$8 sm:$0xf] %v3717_v30 }
 0x262   : > { %2449 = vmatpush1.msra.mxu1 %v1890_v44  ;;  %2379 = vmatprep.subr.mxu0 %v1881_v14  ;;  %v1872_v50 = vmul.f32 %v1840_v31, %v5800_v60  ;;  %v5801_v44 = vld [vmem:[#allocation18_spill] sm:$0xff]  ;;  %v5807_v60 = vsub.f32 1.0, %v4993_v51  ;;  %v5812_v25 = vld [vmem:[#allocation35_spill] sm:$0xff]  ;;  %v5813_v51 = vsub.f32 1.0, %v5024_v29  ;;  %v5821_v29 = vsub.f32 1.0, %v5047_v21 }
 0x263   : > { %2450 = vmatprep.subr.mxu1 %v1883_v53  ;;  %2380 = vmatpush1.msra.mxu0 %v1880_v42  ;;  %v1874_v14 = vmul.f32 %v1842_v62, %v5801_v44  ;;  %v5803_v53 = vld [vmem:[#allocation12_spill] sm:$0xff]  ;;  %v5808_v44 = vld [vmem:[#allocation37_spill] sm:$0xff]  ;;  %3356 = vst [vmem:[%s5376_s17 + $0x2] ss:$8 sm:$0xf0] %v3717_v30 }
 0x264   : > { %2451 = vmatpush1.msra.mxu1 %v1882_v58  ;;  %2381 = vmatprep.subr.mxu0 %v1873_v38  ;;  %v1867_v42 = vmul.f32 %v1835_v26, %v5803_v53  ;;  %v5805_v58 = vld [vmem:[#allocation13_spill] sm:$0xff]  ;;  %v5811_v53 = vsub.f32 1.0, %v5012_v4  ;;  %v5818_v4 = vld [vmem:[#allocation20_spill] sm:$0xff] }
 0x265   : > { %2452 = vmatprep.subr.mxu1 %v1875_v9  ;;  %2382 = vmatpush1.msra.mxu0 %v1872_v50  ;;  %v1866_v38 = vmul.f32 %v1834_v8, %v5805_v58  ;;  %v5806_v9 = vld [vmem:[#allocation36_spill] sm:$0xff] }
 0x266   : > { %2453 = vmatpush1.msra.mxu1 %v1874_v14  ;;  %2383 = vmatprep.subr.mxu0 %v1865_v40  ;;  %v1917_v50 = vmul.f32 %v5807_v60, %v5806_v9  ;;  %v5809_v14 = vsub.f32 1.0, %v5008_v12  ;;  %v5810_v40 = vld [vmem:[#allocation34_spill] sm:$0xff]  ;;  %v5814_v58 = vld [vmem:[#allocation32_spill] sm:$0xff]  ;;  %v5816_v12 = vld [vmem:[#allocation33_spill] sm:$0xff]  ;;  %v5817_v60 = vsub.f32 1.0, %v5026_v3 }
 0x267   : > { %2454 = vmatprep.subr.mxu1 %v1867_v42  ;;  %2384 = vmatpush1.msra.mxu0 %v1864_v46  ;;  %v1916_v42 = vmul.f32 %v5811_v53, %v5810_v40  ;;  %v1918_v46 = vmul.f32 %v5813_v51, %v5812_v25  ;;  %v5822_v25 = vld [vmem:[#allocation19_spill] sm:$0xff] }
 0x268   : > { %2417 = vmatprep.mubr.f32.mxu0 %v5674_v7  ;;  %2455 = vmatpush1.msra.mxu1 %v1866_v38  ;;  %v1919_v36 = vmul.f32 %v5809_v14, %v5808_v44  ;;  %v5815_v38 = vsub.f32 1.0, %v5016_v43  ;;  %v1911_v44 = vmul.f32 %v5817_v60, %v5816_v12  ;;  %v5819_v14 = vsub.f32 1.0, %v5035_v17  ;;  %v5830_v12 = vld [vmem:[#allocation28_spill] sm:$0xff]  ;;  %v5832_v60 = vld [vmem:[#allocation23_spill] sm:$0xff] }
 0x269   : > { %2488 = vmatprep.mubr.f32.mxu1 %v5674_v7  ;;  %3347 = vmatmul.mubr.msk.f32.vlgmr.msra.gmra.mxu0 %vm671_vm0, %v4950_v45  ;;  %v5823_v43 = vsub.f32 1.0, %v4997_v61  ;;  %v5826_v17 = vsub.f32 1.0, %v5001_v57  ;;  %v5829_v61 = vsub.f32 1.0, %v4983_v20  ;;  %v5837_v20 = vld [vmem:[#allocation52_spill] sm:$0xff] }
 0x26a   : > { %3348 = vmatmul.mubr.msk.f32.vlgmr.msra.gmra.mxu1 %vm671_vm0, %v4950_v45  ;;  %2519 = vmatprep.subr.mxu0 %v1917_v50  ;;  %v1909_v9 = vmul.f32 %v5815_v38, %v5814_v58  ;;  %v1908_v40 = vmul.f32 %v5819_v14, %v5818_v4  ;;  %v5820_v50 = vld [vmem:[#allocation27_spill] sm:$0xff]  ;;  %v5835_v14 = vld [vmem:[#allocation25_spill] sm:$0xff]  ;;  %v1921_v24 = vmul.f32 %v1857_v49, %v5837_v20  ;;  %v5841_v49 = vld [vmem:[#allocation48_spill] sm:$0xff] }
 0x26b   : > { %2590 = vmatprep.subr.mxu1 %v1919_v36  ;;  %2520 = vmatpush1.msra.mxu0 %v1916_v42  ;;  %v1910_v53 = vmul.f32 %v5821_v29, %v5820_v50  ;;  %v1901_v51 = vmul.f32 %v5823_v43, %v5822_v25  ;;  %v5824_v36 = vld [vmem:[#allocation31_spill] sm:$0xff]  ;;  %v5825_v42 = vld [vmem:[#allocation29_spill] sm:$0xff]  ;;  %v1920_v29 = vmul.f32 %v1856_v15, %v5839_v6 }
 0x26c   : > { %2591 = vmatpush1.msra.mxu1 %v1918_v46  ;;  %2521 = vmatprep.subr.mxu0 %v1909_v9  ;;  %v1903_v3 = vmul.f32 %v1839_v18, %v5824_v36  ;;  %v1900_v58 = vmul.f32 %v5826_v17, %v5825_v42  ;;  %v5827_v46 = vld [vmem:[#allocation30_spill] sm:$0xff]  ;;  %v5828_v38 = vld [vmem:[#allocation15_spill] sm:$0xff]  ;;  %v1895_v18 = vmul.f32 %v5831_v56, %v5830_v12 }
 0x26d   : > { %2592 = vmatprep.subr.mxu1 %v1911_v44  ;;  %2522 = vmatpush1.msra.mxu0 %v1908_v40  ;;  %v1902_v21 = vmul.f32 %v1838_v48, %v5827_v46  ;;  %v1893_v9 = vmul.f32 %v5829_v61, %v5828_v38  ;;  %v5833_v44 = vld [vmem:[#allocation54_spill] sm:$0xff]  ;;  %v1894_v48 = vmul.f32 %v5836_v32, %v5835_v14  ;;  %v5838_v40 = vld [vmem:[#allocation53_spill] sm:$0xff]  ;;  %v5844_v43 = vld [vmem:[#allocation47_spill] sm:$0xff] }
 0x26e   : > { %2593 = vmatpush1.msra.mxu1 %v1910_v53  ;;  %2523 = vmatprep.subr.mxu0 %v1901_v51  ;;  %v5834_v57 = vsub.f32 1.0, %v5833_v44  ;;  %v1923_v50 = vmul.f32 %v1859_v54, %v5838_v40  ;;  %v5840_v53 = vld [vmem:[#allocation51_spill] sm:$0xff]  ;;  %v1913_v25 = vmul.f32 %v1849_v52, %v5841_v49  ;;  %v1915_v54 = vmul.f32 %v1851_v55, %v5842_v59  ;;  %v5846_v52 = vld [vmem:[#allocation45_spill] sm:$0xff]  ;;  %v5847_v55 = vld [vmem:[#allocation42_spill] sm:$0xff] }
 0x26f   : > { %2594 = vmatprep.subr.mxu1 %v1903_v3  ;;  %2524 = vmatpush1.msra.mxu0 %v1900_v58  ;;  %v1922_v23 = vmul.f32 %v1858_v1, %v5840_v53  ;;  %v1912_v15 = vmul.f32 %v1848_v13, %v5843_v22  ;;  %v1914_v0 = vmul.f32 %v1850_v41, %v5844_v43  ;;  %v5845_v1 = vld [vmem:[#allocation44_spill] sm:$0xff]  ;;  %v5848_v13 = vld [vmem:[#allocation43_spill] sm:$0xff] }
 0x270   : > { %v1892_v4 = vmul.f32 %v5834_v57, %v5832_v60  ;;  %2595 = vmatpush1.msra.mxu1 %v1902_v21  ;;  %2525 = vmatprep.subr.mxu0 %v1893_v9  ;;  %v1905_v35 = vmul.f32 %v1841_v33, %v5845_v1  ;;  %v1907_v11 = vmul.f32 %v1843_v10, %v5846_v52  ;;  %v5849_v41 = vld [vmem:[#allocation40_spill] sm:$0xff]  ;;  %v5850_v33 = vld [vmem:[#allocation41_spill] sm:$0xff]  ;;  %v5851_v10 = vld [vmem:[#allocation38_spill] sm:$0xff] }
 0x271   : > { %2596 = vmatprep.subr.mxu1 %v1895_v18  ;;  %2559 = vmatprep.mubr.f32.mxu0 %v5674_v7  ;;  %v1904_v27 = vmul.f32 %v1840_v31, %v5847_v55  ;;  %v1906_v47 = vmul.f32 %v1842_v62, %v5848_v13  ;;  %v1897_v39 = vmul.f32 %v1833_v2, %v5849_v41  ;;  %v5852_v31 = vld [vmem:[#allocation39_spill] sm:$0xff]  ;;  %v5853_v46 = vld [vmem:[#allocation16_spill] sm:$0xff] }
 0x272   : > { %2526 = vmatpush1.msra.mxu0 %v1892_v4  ;;  %2597 = vmatpush1.msra.mxu1 %v1894_v48  ;;  %v1899_v16 = vmul.f32 %v1835_v26, %v5850_v33  ;;  %v1896_v5 = vmul.f32 %v1832_v37, %v5851_v10  ;;  %v1898_v28 = vmul.f32 %v1834_v8, %v5852_v31 }
 0x273   : > { %2630 = vmatprep.mubr.f32.mxu1 %v5674_v7  ;;  %3349 = vmatmul.mubr.msk.f32.vlgmr.msra.gmra.mxu0 %vm671_vm0, %v4950_v45 }
 0x274   : > { %3350 = vmatmul.mubr.msk.f32.vlgmr.msra.gmra.mxu1 %vm671_vm0, %v4950_v45  ;;  %2661 = vmatprep.subr.mxu0 %v1921_v24 }
 0x275   : > { %2732 = vmatprep.subr.mxu1 %v1923_v50  ;;  %2662 = vmatpush1.msra.mxu0 %v1920_v29 }
 0x276   : > { %2733 = vmatpush1.msra.mxu1 %v1922_v23  ;;  %2663 = vmatprep.subr.mxu0 %v1913_v25 }
 0x277   : > { %2734 = vmatprep.subr.mxu1 %v1915_v54  ;;  %2664 = vmatpush1.msra.mxu0 %v1912_v15 }
 0x278   : > { %2735 = vmatpush1.msra.mxu1 %v1914_v0  ;;  %2665 = vmatprep.subr.mxu0 %v1905_v35 }
 0x279   : > { %2736 = vmatprep.subr.mxu1 %v1907_v11  ;;  %2666 = vmatpush1.msra.mxu0 %v1904_v27 }
 0x27a   : > { %2737 = vmatpush1.msra.mxu1 %v1906_v47  ;;  %2667 = vmatprep.subr.mxu0 %v1897_v39 }
 0x27b   : > { %2738 = vmatprep.subr.mxu1 %v1899_v16  ;;  %2668 = vmatpush1.msra.mxu0 %v1896_v5 }
 0x27c   : > { %2701 = vmatprep.mubr.f32.mxu0 %v5674_v7  ;;  %2739 = vmatpush1.msra.mxu1 %v1898_v28 }
 0x27d   : > { %2772 = vmatprep.mubr.f32.mxu1 %v5674_v7  ;;  %3351 = vmatmul.mubr.msk.f32.vlgmr.msra.gmra.mxu0 %vm671_vm0, %v4950_v45  ;;  %v3718_v7 = vmov 1966171168  }
 0x27e   : > { %3352 = vmatmul.mubr.msk.f32.vlgmr.msra.gmra.mxu1 %vm671_vm0, %v4950_v45  ;;  %v2813_v26 = vunpack.c.l.s4 %v3718_v7 }
 0x280   : > { %v2814_v36 = vunpack.c.0.s8 %v2813_v26 }
 0x282   : > { %v5405_v21 = vsub.s32 %v2814_v36, %v5853_v46 }
 0x305   : > { %v1993_v34 = vpop.f32.mrf.mxu0 }
 0x306   : > { %v2064_v19 = vpop.f32.mrf.mxu1  ;;  %v5380_v37 = vadd.f32 %v2782_v63, %v1993_v34 }
 0x307   : > { %v1995_v62 = vpop.f32.mrf.mxu0  ;;  %v5384_v45 = vadd.f32 %v2782_v63, %v2064_v19 }
 0x308   : > { %v2066_v2 = vpop.f32.mrf.mxu1  ;;  %v5382_v8 = vadd.f32 %v2782_v63, %v1995_v62  ;;  %v5398_v17 = vmul.f32 %v5380_v37, %v5380_v37 }
 0x309   : > { %v5386_v51 = vadd.f32 %v2782_v63, %v2066_v2  ;;  %v5402_v58 = vmul.f32 %v5384_v45, %v5384_v45 }
 0x30a   : > { %v5390_v3 = vmul.f32 %v5382_v8, %v5382_v8  ;;  %v2808_v38 = vcombine.low %v5380_v37, %v5382_v8 }
 0x30b   : > { %v5394_v42 = vmul.f32 %v5386_v51, %v5386_v51  ;;  %v2809_v61 = vcombine.low %v5384_v45, %v5386_v51 }
 0x30c   : > { %v3065_v44 = vcombine.low %v5398_v17, %v5390_v3  ;;  %v2818_v48 = vrot.slane %v2808_v38, %v5405_v21 }
 0x30d   : > { %v3066_v57 = vcombine.low %v5402_v58, %v5394_v42  ;;  %v2825_v20 = vrot.slane %v2809_v61, %v5405_v21 }
 0x30e   : > { %v3075_v53 = vrot.slane %v3065_v44, %v5405_v21 }
 0x30f   : > { %v3082_v23 = vrot.slane %v3066_v57, %v5405_v21  ;;  %v2840_v54 = vcombine.low %v2818_v48, %v2825_v20 }
 0x311   : > { %v3097_v1 = vcombine.low %v3075_v53, %v3082_v23  ;;  %v2848_v55 = vrot.slane %v2840_v54, %v5405_v21 }
 0x313   : > { %v3105_v41 = vrot.slane %v3097_v1, %v5405_v21 }
 0x315   : > { %v2135_v9 = vpop.f32.mrf.mxu0 }
 0x316   : > { %v5411_v12 = vadd.f32 %v2782_v63, %v2135_v9  ;;  %v2206_v56 = vpop.f32.mrf.mxu1 }
 0x317   : > { %v5413_v18 = vadd.f32 %v2782_v63, %v2206_v56  ;;  %v2137_v60 = vpop.f32.mrf.mxu0 }
 0x318   : > { %v5421_v4 = vmul.f32 %v5411_v12, %v5411_v12  ;;  %v5423_v14 = vadd.f32 %v2782_v63, %v2137_v60  ;;  %v2208_v32 = vpop.f32.mrf.mxu1 }
 0x319   : > { %v5429_v24 = vmul.f32 %v5413_v18, %v5413_v18  ;;  %v5431_v40 = vadd.f32 %v2782_v63, %v2208_v32 }
 0x31a   : > { %v2810_v50 = vcombine.low %v5411_v12, %v5423_v14  ;;  %v5437_v6 = vmul.f32 %v5423_v14, %v5423_v14 }
 0x31b   : > { %v2811_v29 = vcombine.low %v5413_v18, %v5431_v40  ;;  %v5445_v49 = vmul.f32 %v5431_v40, %v5431_v40 }
 0x31c   : > { %v2832_v25 = vrot.slane %v2810_v50, %v5405_v21  ;;  %v3067_v59 = vcombine.low %v5421_v4, %v5437_v6 }
 0x31d   : > { %v2839_v22 = vrot.slane %v2811_v29, %v5405_v21  ;;  %v3068_v15 = vcombine.low %v5429_v24, %v5445_v49 }
 0x31e   : > { %v3089_v43 = vrot.slane %v3067_v59, %v5405_v21 }
 0x31f   : > { %v2841_v0 = vcombine.low %v2832_v25, %v2839_v22  ;;  %v3096_v35 = vrot.slane %v3068_v15, %v5405_v21  ;;  %v2277_v52 = vpop.f32.mrf.mxu0 }
 0x320   : > { %v2348_v11 = vpop.f32.mrf.mxu1 }
 0x321   : > { %v2855_v27 = vrot.slane %v2841_v0, %v5405_v21  ;;  %v3098_v13 = vcombine.low %v3089_v43, %v3096_v35  ;;  %v2279_v33 = vpop.f32.mrf.mxu0 }
 0x322   : > { %v2350_v16 = vpop.f32.mrf.mxu1  ;;  %v2868_v5 = vcombine.low %v2277_v52, %v2279_v33 }
 0x323   : > { %v2856_v47 = vcombine.low %v2848_v55, %v2855_v27  ;;  %v3112_v39 = vrot.slane %v3098_v13, %v5405_v21  ;;  %v2869_v31 = vcombine.low %v2348_v11, %v2350_v16 }
 0x324   : > { %v2878_v34 = vrot.slane %v2868_v5, %v5405_v21 }
 0x325   : > { %2858 = vst [vmem:[%s5376_s17] ss:$8 sm:$0xf] %v2856_v47  ;;  %2859 = vst [vmem:[%s5376_s17] ss:$8 sm:$0xf0] %v2856_v47  ;;  %v3113_v10 = vcombine.low %v3105_v41, %v3112_v39  ;;  %v2885_v19 = vrot.slane %v2869_v31, %v5405_v21 }
 0x326   : > { %3359 = vst [vmem:[%s5376_s17 + $0x4] ss:$8 sm:$0xf] %v2856_v47  ;;  %3360 = vst [vmem:[%s5376_s17 + $0x4] ss:$8 sm:$0xf0] %v2856_v47 }
 0x327   : > { %3363 = vst [vmem:[%s5376_s17 + $0x6] ss:$8 sm:$0xf] %v3113_v10  ;;  %3364 = vst [vmem:[%s5376_s17 + $0x6] ss:$8 sm:$0xf0] %v3113_v10  ;;  %v2900_v36 = vcombine.low %v2878_v34, %v2885_v19 }
 0x329   : > { %v2419_v28 = vpop.f32.mrf.mxu0  ;;  %v2908_v61 = vrot.slane %v2900_v36, %v5405_v21 }
 0x32a   : > { %v2490_v30 = vpop.f32.mrf.mxu1 }
 0x32b   : > { %v2421_v63 = vpop.f32.mrf.mxu0 }
 0x32c   : > { %v2870_v62 = vcombine.low %v2419_v28, %v2421_v63  ;;  %v2492_v2 = vpop.f32.mrf.mxu1 }
 0x32d   : > { %v2871_v7 = vcombine.low %v2490_v30, %v2492_v2 }
 0x32e   : > { %v2892_v26 = vrot.slane %v2870_v62, %v5405_v21 }
 0x32f   : > { %v2899_v46 = vrot.slane %v2871_v7, %v5405_v21 }
 0x331   : > { %v2901_v38 = vcombine.low %v2892_v26, %v2899_v46 }
 0x333   : > { %v2915_v9 = vrot.slane %v2901_v38, %v5405_v21  ;;  %v2561_v56 = vpop.f32.mrf.mxu0 }
 0x334   : > { %v2632_v60 = vpop.f32.mrf.mxu1  ;;  %v2988_v53 = vmul.f32 %v5380_v37, %v2561_v56  ;;  %v3118_v23 = vmul.f32 %v5398_v17, %v2561_v56 }
 0x335   : > { %v2916_v44 = vcombine.low %v2908_v61, %v2915_v9  ;;  %v2563_v57 = vpop.f32.mrf.mxu0  ;;  %v2990_v25 = vmul.f32 %v5384_v45, %v2632_v60  ;;  %v3120_v59 = vmul.f32 %v5402_v58, %v2632_v60 }
 0x336   : > { %v2989_v32 = vmul.f32 %v5382_v8, %v2563_v57  ;;  %v3119_v48 = vmul.f32 %v5390_v3, %v2563_v57  ;;  %v2634_v20 = vpop.f32.mrf.mxu1  ;;  %v2932_v54 = vcombine.low %v2561_v56, %v2563_v57 }
 0x337   : > { %3353 = vst [vmem:[%s5376_s17 + $0x1] ss:$8 sm:$0xf] %v2916_v44  ;;  %3354 = vst [vmem:[%s5376_s17 + $0x1] ss:$8 sm:$0xf0] %v2916_v44  ;;  %v2991_v50 = vmul.f32 %v5386_v51, %v2634_v20  ;;  %v3121_v29 = vmul.f32 %v5394_v42, %v2634_v20  ;;  %v2933_v15 = vcombine.low %v2632_v60, %v2634_v20 }
 0x338   : > { %v3004_v22 = vcombine.low %v2988_v53, %v2989_v32  ;;  %v3134_v8 = vcombine.low %v3118_v23, %v3119_v48  ;;  %v2942_v1 = vrot.slane %v2932_v54, %v5405_v21 }
 0x339   : > { %v3005_v3 = vcombine.low %v2990_v25, %v2991_v50  ;;  %v3135_v43 = vcombine.low %v3120_v59, %v3121_v29  ;;  %v2949_v37 = vrot.slane %v2933_v15, %v5405_v21 }
 0x33a   : > { %v3014_v51 = vrot.slane %v3004_v22, %v5405_v21  ;;  %v3144_v42 = vrot.slane %v3134_v8, %v5405_v21 }
 0x33b   : > { %v3021_v45 = vrot.slane %v3005_v3, %v5405_v21  ;;  %v3151_v58 = vrot.slane %v3135_v43, %v5405_v21  ;;  %v2964_v31 = vcombine.low %v2942_v1, %v2949_v37 }
 0x33d   : > { %v2703_v0 = vpop.f32.mrf.mxu0  ;;  %v2972_v63 = vrot.slane %v2964_v31, %v5405_v21 }
 0x33e   : > { %v2774_v17 = vpop.f32.mrf.mxu1  ;;  %v2992_v35 = vmul.f32 %v5411_v12, %v2703_v0  ;;  %v3122_v52 = vmul.f32 %v5421_v4, %v2703_v0 }
 0x33f   : > { %v2705_v11 = vpop.f32.mrf.mxu0  ;;  %v2994_v55 = vmul.f32 %v5413_v18, %v2774_v17  ;;  %v3124_v39 = vmul.f32 %v5429_v24, %v2774_v17 }
 0x340   : > { %v2934_v27 = vcombine.low %v2703_v0, %v2705_v11  ;;  %v2993_v13 = vmul.f32 %v5423_v14, %v2705_v11  ;;  %v3123_v47 = vmul.f32 %v5437_v6, %v2705_v11  ;;  %v2776_v41 = vpop.f32.mrf.mxu1  ;;  %v3036_v6 = vcombine.low %v3014_v51, %v3021_v45 }
 0x341   : > { %v2935_v33 = vcombine.low %v2774_v17, %v2776_v41  ;;  %v2995_v16 = vmul.f32 %v5431_v40, %v2776_v41  ;;  %v3125_v10 = vmul.f32 %v5445_v49, %v2776_v41  ;;  %v3166_v40 = vcombine.low %v3144_v42, %v3151_v58 }
 0x342   : > { %v2956_v12 = vrot.slane %v2934_v27, %v5405_v21  ;;  %v3006_v5 = vcombine.low %v2992_v35, %v2993_v13  ;;  %v3136_v4 = vcombine.low %v3122_v52, %v3123_v47  ;;  %v3044_v26 = vrot.slane %v3036_v6, %v5405_v21 }
 0x343   : > { %v2963_v18 = vrot.slane %v2935_v33, %v5405_v21  ;;  %v3007_v14 = vcombine.low %v2994_v55, %v2995_v16  ;;  %v3137_v28 = vcombine.low %v3124_v39, %v3125_v10  ;;  %v3174_v36 = vrot.slane %v3166_v40, %v5405_v21 }
 0x344   : > { %v3028_v30 = vrot.slane %v3006_v5, %v5405_v21  ;;  %v3158_v24 = vrot.slane %v3136_v4, %v5405_v21 }
 0x345   : > { %v2965_v49 = vcombine.low %v2956_v12, %v2963_v18  ;;  %v3035_v34 = vrot.slane %v3007_v14, %v5405_v21  ;;  %v3165_v19 = vrot.slane %v3137_v28, %v5405_v21 }
 0x347   : > { %v2979_v62 = vrot.slane %v2965_v49, %v5405_v21  ;;  %v3037_v2 = vcombine.low %v3028_v30, %v3035_v34  ;;  %v3167_v7 = vcombine.low %v3158_v24, %v3165_v19 }
 0x349   : > { %v2980_v46 = vcombine.low %v2972_v63, %v2979_v62  ;;  %v3051_v38 = vrot.slane %v3037_v2, %v5405_v21  ;;  %v3181_v61 = vrot.slane %v3167_v7, %v5405_v21 }
 0x34b   : > { %3357 = vst [vmem:[%s5376_s17 + $0x3] ss:$8 sm:$0xf] %v2980_v46  ;;  %3358 = vst [vmem:[%s5376_s17 + $0x3] ss:$8 sm:$0xf0] %v2980_v46  ;;  %v3052_v9 = vcombine.low %v3044_v26, %v3051_v38  ;;  %v3182_v56 = vcombine.low %v3174_v36, %v3181_v61 }
 0x34d   : > { %3361 = vst [vmem:[%s5376_s17 + $0x5] ss:$8 sm:$0xf] %v3052_v9  ;;  %3362 = vst [vmem:[%s5376_s17 + $0x5] ss:$8 sm:$0xf0] %v3052_v9 }
 0x34e   : > { %3365 = vst [vmem:[%s5376_s17 + $0x7] ss:$8 sm:$0xf] %v3182_v56  ;;  %3366 = vst [vmem:[%s5376_s17 + $0x7] ss:$8 sm:$0xf0] %v3182_v56 }
 0x34f   : > { %3651 = shalt.err (!%p3648_p0)
}
 0x350   : > { %s3652_s28 = scalar_lea.hbm %s5514_s23, 1024  ;;  %s3656_s5 = scalar_lea.hbm %s5563_s2, 2048 }
 0x351   : > { %p3653_p5 = scmp.ne.s32.totalorder %s5514_s23, %s3652_s28  ;;  %p3657_p1 = scmp.lt.s32.totalorder %s5514_s23, %s5563_s2 }
 0x352   : > { %p3658_p4 = scmp.lt.s32.totalorder %s3656_s5, %s3652_s28 }
 0x353   : > { %p3654_p9 = pnand %p3653_p5, %p5854_p3 }
 0x354   : > { %p3659_p6 = por %p3658_p4, %p3657_p1 }
 0x355   : > { %p3655_p12 = pneg %p3654_p9 }
 0x357   : > { %p3660_p8 = pnand %p3659_p6, %p3655_p12 }
 0x359   : > { %3663 = shalt.err (!%p3660_p8)
}
 0x35a   : > { %3380 = dma.vmem_to_hbm [thread:$0]  (%p5854_p3), %s5516_s18, 1024, %s5514_s23, %s3188_s13  }
 0x35b PF: > { %s3214_s14 = sand.u32 1, %s3694_s9   ;;  %p5855_p11 = scmp.ne.s32.totalorder %s5614_s16, 0 }
 0x35c   : > { %p5856_p7 = scmp.ge.s32.totalorder %s3706_s12, 2  ;;  %s3215_s22 = scalar_lea.sflag [#allocation4], %s3214_s14 }
 0x35e   : > { %p3391_p10 = pnand %p5856_p7, %p5855_p11 }
 0x360   : > { %p3392_p2 = pneg %p3391_p10 }
 0x362   : > { %3689 = dma.done.wait (%p3392_p2), %s3215_s22, 1024  }
 0x363   : > { %3691 = vsyncadd (%p3392_p2), %s3215_s22, 4294966272  ;;  %p16_p13 = scmp.ge.s32.totalorder %s3789_s21, 4   ;;  %s5857_s9 = smov %s3698_s10 }
 0x364   : > { %s5858_s10 = smov %s3702_s11  ;;  %s5859_s11 = smov %s3806_s29 }
 0x365   : > { %s5860_s12 = smov %s3789_s21  ;;  %18 = sbr.rel (!%p16_p13) target bundleno = 6 (0x6), region = 84 }
 0x36a   :  { %3220 = vsyncpa [#allocation3], 1 }
 0x36b   :  { %3222 = vsyncpa [#allocation3 + $0x1], 1 }
 0x36c   :  { %3223 = vsyncpa [#allocation6], 1 }
 0x36d   :  { %3224 = vsyncpa [#allocation4], 1 }
 0x36e   :  { %3226 = vsyncpa [#allocation4 + $0x1], 1 }

</bundles_post_ra>
